<compile_context>
chip_gen: v6e
topology: v6e:2x2x1
jax: 0.10.0
libtpu: 0.0.40
codegen_flags: <defaults>
</compile_context>

<pallas_src>
import functools

import numpy as np
import jax
import jax.numpy as jnp
from jax import lax
from jax.experimental import pallas as pl
from jax.experimental.pallas import tpu as pltpu


# ------------------------------ shared helpers -------------------------------------

def _softmax(x):
    m = jnp.max(x, axis=-1, keepdims=True)
    e = jnp.exp(x - m)
    return e / jnp.sum(e, axis=-1, keepdims=True)


def _rand_bn(key, n):
    k = jax.random.split(key, 4)
    gamma = 1.0 + 0.1 * jax.random.normal(k[0], (n,), jnp.float32)
    beta = 0.1 * jax.random.normal(k[1], (n,), jnp.float32)
    mean = 0.1 * jax.random.normal(k[2], (n,), jnp.float32)
    var = 1.0 + 0.1 * jnp.abs(jax.random.normal(k[3], (n,), jnp.float32))
    return gamma, beta, mean, var


def _fold_conv_bn(w, bn, eps=1e-5):
    """Fold Conv(bias=False) + BatchNorm(eval) into an effective (W, b)."""
    gamma, beta, mean, var = bn
    scale = gamma / jnp.sqrt(var + eps)
    w_eff = w * scale.reshape((-1,) + (1,) * (w.ndim - 1))
    return w_eff, beta - mean * scale


# ------------------------------ parameter init -------------------------------------

def _init_block(key, dim_in, dim_out, proj_factor, heads, dim_head,
                layer_downsample, Hl, Wl):
    attn_in = dim_out // proj_factor
    inner = heads * dim_head
    has_shortcut = (dim_in != dim_out) or layer_downsample
    ks = jax.random.split(key, 10)
    blk = {"has_shortcut": has_shortcut, "downsample": layer_downsample,
           "heads": heads, "dim_head": dim_head, "H": Hl, "W": Wl}

    if has_shortcut:
        k_, s_, p_ = (3, 2, 1) if layer_downsample else (1, 1, 0)
        blk["sc_ksp"] = (k_, s_, p_)
        w = jax.random.normal(ks[0], (dim_out, dim_in, k_, k_),
                              jnp.float32) / float(np.sqrt(dim_in * k_ * k_))
        blk["wsc"], blk["bsc"] = _fold_conv_bn(w, _rand_bn(ks[1], dim_out))

    w1 = jax.random.normal(ks[2], (attn_in, dim_in), jnp.float32) / float(np.sqrt(dim_in))
    blk["w1"], blk["b1"] = _fold_conv_bn(w1, _rand_bn(ks[3], attn_in))

    blk["wqkv"] = jax.random.normal(ks[4], (3 * inner, attn_in),
                                    jnp.float32) / float(np.sqrt(attn_in))
    kh, kw = jax.random.split(ks[5])
    blk["emb_h"] = jax.random.normal(kh, (Hl, dim_head), jnp.float32) * dim_head ** -0.5
    blk["emb_w"] = jax.random.normal(kw, (Wl, dim_head), jnp.float32) * dim_head ** -0.5

    gamma, beta, mean, var = _rand_bn(ks[6], inner)      # standalone BN after pool
    s = gamma / jnp.sqrt(var + 1e-5)
    blk["bn_s"], blk["bn_b"] = s, beta - mean * s

    w2 = jax.random.normal(ks[7], (dim_out, inner), jnp.float32) / float(np.sqrt(inner))
    blk["w2"], blk["b2"] = _fold_conv_bn(w2, _rand_bn(ks[8], dim_out))
    return blk


def init_bottle_stack_params(key, *, dim, fmap_size, dim_out, proj_factor,
                             num_layers, heads, dim_head, downsample=True):
    Hf, Wf = (fmap_size, fmap_size) if not isinstance(fmap_size, tuple) else fmap_size
    keys = jax.random.split(key, num_layers)
    blocks = []
    for i in range(num_layers):
        is_first = i == 0
        layer_dim = dim if is_first else dim_out
        layer_downsample = is_first and downsample
        divisor = 2 if (downsample and not is_first) else 1
        blocks.append(_init_block(keys[i], layer_dim, dim_out, proj_factor,
                                  heads, dim_head, layer_downsample,
                                  Hf // divisor, Wf // divisor))
    return {"blocks": blocks, "dim": dim, "fmap": (Hf, Wf)}


# ------------------------------------ kernel ---------------------------------------

def _block_kernel(*refs, has_shortcut, do_pool, heads, dim_head, bt, hw):
    """One fused BottleBlock step for `bt` images (rows flattened as (bt*hw, C))."""
    f32, bf16 = jnp.float32, jnp.bfloat16
    it = iter(refs)
    x_ref = next(it)                                     # (bt*hw, Cin)       bf16
    if has_shortcut:
        p_ref = next(it)                                 # (bt*hwo, k*k*Cin)  bf16
        wsc_ref = next(it)                               # (k*k*Cin, Cout)    bf16
        bsc_ref = next(it)                               # (1, Cout)          f32
    if do_pool:
        pool_ref = next(it)                              # (hwo, hw)          bf16
    w1_ref, b1_ref = next(it), next(it)                  # (Cin, Ap) bf16, (1, Ap) f32
    wq_ref, wk_ref, wv_ref = next(it), next(it), next(it)  # (heads, Ap, dh)  bf16
    emb_ref = next(it)                                   # (hw, dh)           f32
    bns_ref, bnb_ref = next(it), next(it)                # (1, inner)         f32
    w2_ref, b2_ref = next(it), next(it)                  # (inner, Cout) bf16, (1, Cout) f32
    out_ref = next(it)                                   # (bt*hwo, Cout)     bf16

    scale = dim_head ** -0.5

    x = x_ref[...]                                       # (bt*hw, Cin) bf16

    # 1x1 conv + folded BN + ReLU  (attn_in zero-padded to lane-dense width Ap)
    h = jax.nn.relu(jnp.dot(x, w1_ref[...], preferred_element_type=f32) + b1_ref[...])

    # heads-batched Q/K/V projections: one dot_general each, no per-head lane slices.
    hb = jnp.broadcast_to(h.astype(bf16)[None], (heads,) + h.shape)   # (heads, M, Ap)
    proj = (((2,), (1,)), ((0,), (0,)))
    q = lax.dot_general(hb, wq_ref[...], proj, preferred_element_type=f32) * scale
    k = lax.dot_general(hb, wk_ref[...], proj, preferred_element_type=f32)
    v = lax.dot_general(hb, wv_ref[...], proj, preferred_element_type=f32)

    emb = emb_ref[...][None]                             # (1, hw, dh) f32

    rows = []
    for b in range(bt):                                  # static, small (bt <= 8)
        sl = slice(b * hw, (b + 1) * hw)
        qb = q[:, sl, :].astype(bf16)                    # (heads, hw, dh)
        # fold the abs-pos embedding into K:  q.k + q.emb == q.(k + emb)  (exact)
        kb = (k[:, sl, :] + emb).astype(bf16)
        vb = v[:, sl, :].astype(bf16)
        sim = lax.dot_general(qb, kb, (((2,), (2,)), ((0,), (0,))),
                              preferred_element_type=f32)           # (heads, hw, hw)
        m = jnp.max(sim, axis=-1, keepdims=True)
        e = jnp.exp(sim - m)
        attn = e * pl.reciprocal(jnp.sum(e, axis=-1, keepdims=True), approx=True)
        ob = lax.dot_general(attn.astype(bf16), vb, (((2,), (1,)), ((0,), (0,))),
                             preferred_element_type=f32)            # (heads, hw, dh)
        yb = jnp.concatenate([ob[hd] for hd in range(heads)], axis=-1)  # (hw, inner)
        if do_pool:
            # AvgPool2d((2,2)) as a small bf16 matmul (pool entries are exact in bf16)
            yb = jnp.dot(pool_ref[...], yb.astype(bf16), preferred_element_type=f32)
        rows.append(yb)
    y = jnp.concatenate(rows, axis=0)                    # (bt*hwo, inner) f32

    # standalone BN + ReLU, then final 1x1 conv + folded BN (no ReLU)
    y = jax.nn.relu(y * bns_ref[...] + bnb_ref[...])
    main = jnp.dot(y.astype(bf16), w2_ref[...], preferred_element_type=f32) + b2_ref[...]

    if has_shortcut:     # 3x3/stride-2 conv + BN + ReLU via wrapper-side im2col patches
        sc = jax.nn.relu(jnp.dot(p_ref[...], wsc_ref[...],
                                 preferred_element_type=f32) + bsc_ref[...])
    else:                # identity shortcut (Cin == Cout, hw == hwo)
        sc = x.astype(f32)
    out_ref[...] = jax.nn.relu(main + sc).astype(out_ref.dtype)


# ----------------------------------- wrapper ---------------------------------------

def _im2col(x_nhwc, ksize, stride, pad):
    b, H, W, C = x_nhwc.shape
    xp = jnp.pad(x_nhwc, ((0, 0), (pad, pad), (pad, pad), (0, 0)))
    Ho = (H + 2 * pad - ksize) // stride + 1
    Wo = (W + 2 * pad - ksize) // stride + 1
    cols = []
    for ky in range(ksize):
        for kx in range(ksize):
            cols.append(xp[:, ky:ky + stride * Ho:stride,
                           kx:kx + stride * Wo:stride, :])
    patches = jnp.stack(cols, axis=3)                    # (B, Ho, Wo, k*k, C)
    return patches.reshape(b * Ho * Wo, ksize * ksize * C)


def _pool_matrix(H, W):
    Ho, Wo = H // 2, W // 2
    P = np.zeros((Ho * Wo, H * W), np.float32)
    for yy in range(Ho):
        for xx in range(Wo):
            o = yy * Wo + xx
            for dy in range(2):
                for dx in range(2):
                    P[o, (2 * yy + dy) * W + (2 * xx + dx)] = 0.25
    return jnp.asarray(P)


def _pick_bt(B, HW, max_rows=512):
    """Largest divisor of B whose per-step row count bt*HW stays <= max_rows."""
    bt = 1
    for cand in range(1, B + 1):
        if B % cand == 0 and cand * HW <= max_rows:
            bt = cand
    return bt


def _block_forward_pallas(x_flat, blk, batch):
    """x_flat: (B*HW, Cin) bf16 rows ordered (b, h, w). Returns (B*HWo, Cout) bf16."""
    f32, bf16 = jnp.float32, jnp.bfloat16
    B = batch
    H, W = blk["H"], blk["W"]
    HW = H * W
    Cin = x_flat.shape[-1]
    heads, dh = blk["heads"], blk["dim_head"]
    inner = heads * dh
    downsample, has_shortcut = blk["downsample"], blk["has_shortcut"]
    Ho, Wo = (H // 2, W // 2) if downsample else (H, W)
    HWo = Ho * Wo
    Cout = blk["w2"].shape[0]
    attn_in = blk["w1"].shape[0]
    Ap = ((attn_in + 127) // 128) * 128                  # lane-dense padded attn_in

    bt = _pick_bt(B, HW)
    grid = (B // bt,)

    ops, specs = [], []

    def add_batched(a, rows_per_step):
        ops.append(a)
        specs.append(pl.BlockSpec((rows_per_step, a.shape[-1]), lambda i: (i, 0)))

    def add_const(a):
        ops.append(a)
        # constant block index -> fetched once; TODO(synk): pl.Buffered(1) here would
        # single-buffer the weight slabs (v7x VMEM headroom) once buffer_count=1 is
        # verified on the target toolchain.
        specs.append(pl.BlockSpec(a.shape, lambda i, _nd=a.ndim: (0,) * _nd))

    add_batched(x_flat, bt * HW)

    if has_shortcut:
        k_, s_, p_ = blk["sc_ksp"]
        patches = _im2col(x_flat.reshape(B, H, W, Cin), k_, s_, p_)   # bf16
        wsc = blk["wsc"].transpose(2, 3, 1, 0).reshape(k_ * k_ * Cin, Cout)
        add_batched(patches, bt * HWo)
        add_const(wsc.astype(bf16))
        add_const(blk["bsc"][None, :].astype(f32))
    if downsample:
        add_const(_pool_matrix(H, W).astype(bf16))

    # 1x1-conv / qkv weights, zero-padded on the attn_in axis to 128-lane width (exact)
    w1p = jnp.zeros((Cin, Ap), f32).at[:, :attn_in].set(blk["w1"].T)
    b1p = jnp.zeros((1, Ap), f32).at[:, :attn_in].set(blk["b1"][None, :])
    wqkv = blk["wqkv"]                                   # (3*inner, attn_in)

    def head_w(part):  # -> (heads, Ap, dh) bf16, zero-padded contraction rows
        w = wqkv[part * inner:(part + 1) * inner].reshape(heads, dh, attn_in)
        w = jnp.transpose(w, (0, 2, 1))                  # (heads, attn_in, dh)
        return jnp.zeros((heads, Ap, dh), f32).at[:, :attn_in, :].set(w).astype(bf16)

    emb = (blk["emb_h"][:, None, :] + blk["emb_w"][None, :, :]).reshape(HW, dh)

    add_const(w1p.astype(bf16)); add_const(b1p)
    add_const(head_w(0)); add_const(head_w(1)); add_const(head_w(2))
    add_const(emb.astype(f32))
    add_const(blk["bn_s"][None, :].astype(f32)); add_const(blk["bn_b"][None, :].astype(f32))
    add_const(blk["w2"].T.astype(bf16)); add_const(blk["b2"][None, :].astype(f32))

    out_spec = pl.BlockSpec((bt * HWo, Cout), lambda i: (i, 0))

    M, Mo, g = bt * HW, bt * HWo, bt * heads
    flops = (2 * M * Cin * Ap + 6 * heads * M * Ap * dh
             + 4 * g * HW * HW * dh + 2 * Mo * inner * Cout)
    if downsample:
        flops += 2 * Mo * HW * inner
    if has_shortcut:
        k_ = blk["sc_ksp"][0]
        flops += 2 * Mo * (k_ * k_ * Cin) * Cout
    nsteps = B // bt
    bytes_accessed = (sum(int(np.prod(a.shape)) * a.dtype.itemsize for a in ops)
                      + B * HWo * Cout * 2)
    cost = pl.CostEstimate(flops=int(nsteps * flops),
                           transcendentals=int(nsteps * g * HW * HW),
                           bytes_accessed=int(bytes_accessed))

    kernel = functools.partial(_block_kernel, has_shortcut=has_shortcut,
                               do_pool=downsample, heads=heads, dim_head=dh,
                               bt=bt, hw=HW)
    return pl.pallas_call(
        kernel,
        out_shape=jax.ShapeDtypeStruct((B * HWo, Cout), bf16),
        grid_spec=pltpu.PrefetchScalarGridSpec(
            num_scalar_prefetch=0, grid=grid,
            in_specs=specs, out_specs=out_spec),
        compiler_params=pltpu.CompilerParams(
            dimension_semantics=("parallel",),
            vmem_limit_bytes=48 * 1024 * 1024),
        cost_estimate=cost,
    )(*ops)


def bottle_stack_forward(x_nchw, params):
    B, c, h, w = x_nchw.shape
    assert c == params["dim"]
    assert (h, w) == params["fmap"]
    # bf16 NHWC-flattened activations carried between blocks (halves activation HBM traffic)
    x = x_nchw.transpose(0, 2, 3, 1).reshape(B * h * w, c).astype(jnp.bfloat16)
    for blk in params["blocks"]:
        x = _block_forward_pallas(x, blk, B)
    last = params["blocks"][-1]
    Ho = last["H"] // 2 if last["downsample"] else last["H"]
    Wo = last["W"] // 2 if last["downsample"] else last["W"]
    Cout = last["w2"].shape[0]
    return x.reshape(B, Ho, Wo, Cout).transpose(0, 3, 1, 2).astype(jnp.float32)


# ----------------------------- pure-JAX reference ----------------------------------

def _block_reference(x, blk):
    f32, bf16 = jnp.float32, jnp.bfloat16
    B, C, H, W = x.shape
    heads, dh = blk["heads"], blk["dim_head"]
    inner = heads * dh
    hw = H * W

    def conv1x1(w, b, t, relu=True):
        y = jnp.einsum("oc,bchw->bohw", w.astype(bf16), t.astype(bf16),
                       preferred_element_type=f32) + b[None, :, None, None]
        return jax.nn.relu(y) if relu else y

    if blk["has_shortcut"]:
        k_, s_, p_ = blk["sc_ksp"]
        sc = lax.conv_general_dilated(
            x.astype(bf16), blk["wsc"].astype(bf16),
            window_strides=(s_, s_), padding=((p_, p_), (p_, p_)),
            dimension_numbers=("NCHW", "OIHW", "NCHW"),
            preferred_element_type=f32)
        sc = jax.nn.relu(sc + blk["bsc"][None, :, None, None])
    else:
        sc = x

    h = conv1x1(blk["w1"], blk["b1"], x)
    qkv = jnp.einsum("oc,bchw->bohw", blk["wqkv"].astype(bf16), h.astype(bf16),
                     preferred_element_type=f32)
    q, k, v = jnp.split(qkv, 3, axis=1)

    def to_heads(t):  # 'b (h d) x y -> b h (x y) d'
        return t.reshape(B, heads, dh, hw).transpose(0, 1, 3, 2)

    q = to_heads(q) * dh ** -0.5
    k, v = to_heads(k), to_heads(v)
    emb = (blk["emb_h"][:, None, :] + blk["emb_w"][None, :, :]).reshape(hw, dh)
    sim = jnp.einsum("bhid,bhjd->bhij", q.astype(bf16), k.astype(bf16),
                     preferred_element_type=f32)
    sim = sim + jnp.einsum("bhid,jd->bhij", q.astype(bf16), emb.astype(bf16),
                           preferred_element_type=f32)
    attn = _softmax(sim)
    out = jnp.einsum("bhij,bhjd->bhid", attn.astype(bf16), v.astype(bf16),
                     preferred_element_type=f32)
    out = out.transpose(0, 1, 3, 2).reshape(B, inner, H, W)
    if blk["downsample"]:
        out = out.reshape(B, inner, H // 2, 2, W // 2, 2).mean(axis=(3, 5))
    out = jax.nn.relu(out * blk["bn_s"][None, :, None, None]
                      + blk["bn_b"][None, :, None, None])
    main = conv1x1(blk["w2"], blk["b2"], out, relu=False)
    return jax.nn.relu(main + sc)


def bottle_stack_reference(x_nchw, params):
    bf16, f32 = jnp.bfloat16, jnp.float32
    # Mirror the kernel's bf16 inter-block activation carry (precision policy only;
    # all matmuls already use bf16 operands with f32 accumulation in both paths).
    x = x_nchw.astype(bf16).astype(f32)
    for blk in params["blocks"]:
        x = _block_reference(x, blk).astype(bf16).astype(f32)
    return x


# ------------------------------------- main -----------------------------------------

if __name__ == "__main__":
    # Small config consistent with the module (default dim_head=128 kept so attention
    # tiles are 128-lane aligned): dim=64, fmap 8x8, dim_out=128, proj_factor=2,
    # num_layers=3, heads=2, dim_head=128, downsample=True -> output (B, 128, 4, 4).
    B, C, Hf, Wf = 2, 64, 8, 8
    key = jax.random.PRNGKey(0)
    kx, kp = jax.random.split(key)
    x = jax.random.normal(kx, (B, C, Hf, Wf), jnp.float32)
    params = init_bottle_stack_params(kp, dim=C, fmap_size=Hf, dim_out=128,
                                      proj_factor=2, num_layers=3, heads=2,
                                      dim_head=128, downsample=True)

    out = jax.block_until_ready(bottle_stack_forward(x, params))
    ref = jax.block_until_ready(bottle_stack_reference(x, params))
    assert out.shape == ref.shape == (B, 128, Hf // 2, Wf // 2)
    # Tolerance covers bf16 operand rounding + EUP approx reciprocal in the softmax.
    if not bool(jnp.allclose(out, ref, atol=2.5e-2, rtol=2.5e-2)):
        raise AssertionError(
            f"kernel/reference mismatch, max abs err = {float(jnp.max(jnp.abs(out - ref)))}")
    print("KERNEL_OK")
</pallas_src>

<mosaic_0001>
module attributes {stable_mosaic.version = 11 : i64} {
  func.func @_block_kernel(%arg0: i32, %arg1: memref<128x64xbf16, #tpu.memory_space<vmem>>, %arg2: memref<32x576xbf16, #tpu.memory_space<vmem>>, %arg3: memref<576x128xbf16, #tpu.memory_space<vmem>>, %arg4: memref<1x128xf32, #tpu.memory_space<vmem>>, %arg5: memref<16x64xbf16, #tpu.memory_space<vmem>>, %arg6: memref<64x128xbf16, #tpu.memory_space<vmem>>, %arg7: memref<1x128xf32, #tpu.memory_space<vmem>>, %arg8: memref<2x128x128xbf16, #tpu.memory_space<vmem>>, %arg9: memref<2x128x128xbf16, #tpu.memory_space<vmem>>, %arg10: memref<2x128x128xbf16, #tpu.memory_space<vmem>>, %arg11: memref<64x128xf32, #tpu.memory_space<vmem>>, %arg12: memref<1x256xf32, #tpu.memory_space<vmem>>, %arg13: memref<1x256xf32, #tpu.memory_space<vmem>>, %arg14: memref<256x128xbf16, #tpu.memory_space<vmem>>, %arg15: memref<1x128xf32, #tpu.memory_space<vmem>>, %arg16: memref<32x128xbf16, #tpu.memory_space<vmem>>) attributes {dimension_semantics = [#tpu.dimension_semantics<parallel>], iteration_bounds = array<i64: 1>, scalar_prefetch = 0 : i64, scratch_operands = 0 : i64, tpu.core_type = #tpu.core_type<tc>, window_params = [{transform_indices = @transform_0, window_bounds = array<i64: 128, 64>}, {transform_indices = @transform_1, window_bounds = array<i64: 32, 576>}, {pipeline_mode = #tpu.pipeline_mode<synchronous>, transform_indices = @transform_2, window_bounds = array<i64: 576, 128>}, {pipeline_mode = #tpu.pipeline_mode<synchronous>, transform_indices = @transform_3, window_bounds = array<i64: 1, 128>}, {pipeline_mode = #tpu.pipeline_mode<synchronous>, transform_indices = @transform_4, window_bounds = array<i64: 16, 64>}, {pipeline_mode = #tpu.pipeline_mode<synchronous>, transform_indices = @transform_5, window_bounds = array<i64: 64, 128>}, {pipeline_mode = #tpu.pipeline_mode<synchronous>, transform_indices = @transform_6, window_bounds = array<i64: 1, 128>}, {pipeline_mode = #tpu.pipeline_mode<synchronous>, transform_indices = @transform_7, window_bounds = array<i64: 2, 128, 128>}, {pipeline_mode = #tpu.pipeline_mode<synchronous>, transform_indices = @transform_8, window_bounds = array<i64: 2, 128, 128>}, {pipeline_mode = #tpu.pipeline_mode<synchronous>, transform_indices = @transform_9, window_bounds = array<i64: 2, 128, 128>}, {pipeline_mode = #tpu.pipeline_mode<synchronous>, transform_indices = @transform_10, window_bounds = array<i64: 64, 128>}, {pipeline_mode = #tpu.pipeline_mode<synchronous>, transform_indices = @transform_11, window_bounds = array<i64: 1, 256>}, {pipeline_mode = #tpu.pipeline_mode<synchronous>, transform_indices = @transform_12, window_bounds = array<i64: 1, 256>}, {pipeline_mode = #tpu.pipeline_mode<synchronous>, transform_indices = @transform_13, window_bounds = array<i64: 256, 128>}, {pipeline_mode = #tpu.pipeline_mode<synchronous>, transform_indices = @transform_14, window_bounds = array<i64: 1, 128>}, {transform_indices = @transform_15, window_bounds = array<i64: 32, 128>}]} {
    %c0 = arith.constant 0 : index
    %c0_0 = arith.constant 0 : index
    %0 = vector.load %arg1[%c0, %c0_0] : memref<128x64xbf16, #tpu.memory_space<vmem>>, vector<128x64xbf16>
    %c0_1 = arith.constant 0 : index
    %c0_2 = arith.constant 0 : index
    %1 = vector.load %arg6[%c0_1, %c0_2] : memref<64x128xbf16, #tpu.memory_space<vmem>>, vector<64x128xbf16>
    %cst = arith.constant dense<0.000000e+00> : vector<128x128xf32>
    %2 = tpu.matmul %0, %1, %cst {dimension_numbers = #tpu.dot_dimension_numbers<[1], [0], [0], [1], [0, 0, 1, 1], [], []>} : vector<128x64xbf16>, vector<64x128xbf16>, vector<128x128xf32> -> vector<128x128xf32>
    %c0_3 = arith.constant 0 : index
    %c0_4 = arith.constant 0 : index
    %3 = vector.load %arg7[%c0_3, %c0_4] : memref<1x128xf32, #tpu.memory_space<vmem>>, vector<1x128xf32>
    %4 = vector.broadcast %3 : vector<1x128xf32> to vector<128x128xf32>
    %5 = arith.addf %2, %4 : vector<128x128xf32>
    %cst_5 = arith.constant 0.000000e+00 : f32
    %6 = vector.broadcast %cst_5 : f32 to vector<128x128xf32>
    %7 = arith.maximumf %5, %6 : vector<128x128xf32>
    %8 = arith.truncf %7 : vector<128x128xf32> to vector<128x128xbf16>
    %9 = vector.shape_cast %8 : vector<128x128xbf16> to vector<1x128x128xbf16>
    %10 = vector.shape_cast %9 : vector<1x128x128xbf16> to vector<1x128x128xbf16>
    %11 = vector.broadcast %10 : vector<1x128x128xbf16> to vector<2x128x128xbf16>
    %c0_6 = arith.constant 0 : index
    %c0_7 = arith.constant 0 : index
    %c0_8 = arith.constant 0 : index
    %12 = vector.load %arg8[%c0_6, %c0_7, %c0_8] : memref<2x128x128xbf16, #tpu.memory_space<vmem>>, vector<2x128x128xbf16>
    %cst_9 = arith.constant dense<0.000000e+00> : vector<2x128x128xf32>
    %13 = tpu.matmul %11, %12, %cst_9 {dimension_numbers = #tpu.dot_dimension_numbers<[2], [1], [1], [2], [0, 0, 0, 1, 1, 2], [0], [0]>} : vector<2x128x128xbf16>, vector<2x128x128xbf16>, vector<2x128x128xf32> -> vector<2x128x128xf32>
    %cst_10 = arith.constant 0.0883883461 : f32
    %14 = vector.broadcast %cst_10 : f32 to vector<2x128x128xf32>
    %15 = arith.mulf %13, %14 : vector<2x128x128xf32>
    %c0_11 = arith.constant 0 : index
    %c0_12 = arith.constant 0 : index
    %c0_13 = arith.constant 0 : index
    %16 = vector.load %arg9[%c0_11, %c0_12, %c0_13] : memref<2x128x128xbf16, #tpu.memory_space<vmem>>, vector<2x128x128xbf16>
    %cst_14 = arith.constant dense<0.000000e+00> : vector<2x128x128xf32>
    %17 = tpu.matmul %11, %16, %cst_14 {dimension_numbers = #tpu.dot_dimension_numbers<[2], [1], [1], [2], [0, 0, 0, 1, 1, 2], [0], [0]>} : vector<2x128x128xbf16>, vector<2x128x128xbf16>, vector<2x128x128xf32> -> vector<2x128x128xf32>
    %c0_15 = arith.constant 0 : index
    %c0_16 = arith.constant 0 : index
    %c0_17 = arith.constant 0 : index
    %18 = vector.load %arg10[%c0_15, %c0_16, %c0_17] : memref<2x128x128xbf16, #tpu.memory_space<vmem>>, vector<2x128x128xbf16>
    %cst_18 = arith.constant dense<0.000000e+00> : vector<2x128x128xf32>
    %19 = tpu.matmul %11, %18, %cst_18 {dimension_numbers = #tpu.dot_dimension_numbers<[2], [1], [1], [2], [0, 0, 0, 1, 1, 2], [0], [0]>} : vector<2x128x128xbf16>, vector<2x128x128xbf16>, vector<2x128x128xf32> -> vector<2x128x128xf32>
    %c0_19 = arith.constant 0 : index
    %c0_20 = arith.constant 0 : index
    %20 = vector.load %arg11[%c0_19, %c0_20] : memref<64x128xf32, #tpu.memory_space<vmem>>, vector<64x128xf32>
    %21 = vector.shape_cast %20 : vector<64x128xf32> to vector<1x64x128xf32>
    %22 = vector.extract_strided_slice %15 {offsets = [0, 0, 0], sizes = [2, 64, 128], strides = [1, 1, 1]} : vector<2x128x128xf32> to vector<2x64x128xf32>
    %23 = arith.truncf %22 : vector<2x64x128xf32> to vector<2x64x128xbf16>
    %24 = vector.extract_strided_slice %17 {offsets = [0, 0, 0], sizes = [2, 64, 128], strides = [1, 1, 1]} : vector<2x128x128xf32> to vector<2x64x128xf32>
    %25 = vector.broadcast %21 : vector<1x64x128xf32> to vector<2x64x128xf32>
    %26 = arith.addf %24, %25 : vector<2x64x128xf32>
    %27 = arith.truncf %26 : vector<2x64x128xf32> to vector<2x64x128xbf16>
    %28 = vector.extract_strided_slice %19 {offsets = [0, 0, 0], sizes = [2, 64, 128], strides = [1, 1, 1]} : vector<2x128x128xf32> to vector<2x64x128xf32>
    %29 = arith.truncf %28 : vector<2x64x128xf32> to vector<2x64x128xbf16>
    %cst_21 = arith.constant dense<0.000000e+00> : vector<2x64x64xf32>
    %30 = tpu.matmul %23, %27, %cst_21 {dimension_numbers = #tpu.dot_dimension_numbers<[2], [2], [1], [1], [0, 0, 0, 1, 1, 1], [0], [0]>} : vector<2x64x128xbf16>, vector<2x64x128xbf16>, vector<2x64x64xf32> -> vector<2x64x64xf32>
    %cst_22 = arith.constant dense<0xFF800000> : vector<2x64xf32>
    %31 = vector.multi_reduction <maximumf>, %30, %cst_22 [2] : vector<2x64x64xf32> to vector<2x64xf32>
    %32 = vector.shape_cast %31 : vector<2x64xf32> to vector<2x64x1xf32>
    %33 = vector.broadcast %32 : vector<2x64x1xf32> to vector<2x64x64xf32>
    %34 = arith.subf %30, %33 : vector<2x64x64xf32>
    %35 = math.exp %34 : vector<2x64x64xf32>
    %cst_23 = arith.constant dense<0.000000e+00> : vector<2x64xf32>
    %36 = vector.multi_reduction <add>, %35, %cst_23 [2] : vector<2x64x64xf32> to vector<2x64xf32>
    %37 = vector.shape_cast %36 : vector<2x64xf32> to vector<2x64x1xf32>
    %38 = tpu.reciprocal %37 {approx = true} : vector<2x64x1xf32> -> vector<2x64x1xf32>
    %39 = vector.broadcast %38 : vector<2x64x1xf32> to vector<2x64x64xf32>
    %40 = arith.mulf %35, %39 : vector<2x64x64xf32>
    %41 = arith.truncf %40 : vector<2x64x64xf32> to vector<2x64x64xbf16>
    %cst_24 = arith.constant dense<0.000000e+00> : vector<2x64x128xf32>
    %42 = tpu.matmul %41, %29, %cst_24 {dimension_numbers = #tpu.dot_dimension_numbers<[2], [1], [1], [2], [0, 0, 0, 1, 1, 2], [0], [0]>} : vector<2x64x64xbf16>, vector<2x64x128xbf16>, vector<2x64x128xf32> -> vector<2x64x128xf32>
    %43 = vector.extract_strided_slice %42 {offsets = [0, 0, 0], sizes = [1, 64, 128], strides = [1, 1, 1]} : vector<2x64x128xf32> to vector<1x64x128xf32>
    %44 = vector.shape_cast %43 : vector<1x64x128xf32> to vector<64x128xf32>
    %45 = vector.extract_strided_slice %42 {offsets = [1, 0, 0], sizes = [1, 64, 128], strides = [1, 1, 1]} : vector<2x64x128xf32> to vector<1x64x128xf32>
    %46 = vector.shape_cast %45 : vector<1x64x128xf32> to vector<64x128xf32>
    %47 = tpu.concatenate %44, %46 in 1 : vector<64x128xf32>, vector<64x128xf32> -> vector<64x256xf32>
    %c0_25 = arith.constant 0 : index
    %c0_26 = arith.constant 0 : index
    %48 = vector.load %arg5[%c0_25, %c0_26] : memref<16x64xbf16, #tpu.memory_space<vmem>>, vector<16x64xbf16>
    %49 = arith.truncf %47 : vector<64x256xf32> to vector<64x256xbf16>
    %cst_27 = arith.constant dense<0.000000e+00> : vector<16x256xf32>
    %50 = tpu.matmul %48, %49, %cst_27 {dimension_numbers = #tpu.dot_dimension_numbers<[1], [0], [0], [1], [0, 0, 1, 1], [], []>} : vector<16x64xbf16>, vector<64x256xbf16>, vector<16x256xf32> -> vector<16x256xf32>
    %51 = vector.extract_strided_slice %15 {offsets = [0, 64, 0], sizes = [2, 64, 128], strides = [1, 1, 1]} : vector<2x128x128xf32> to vector<2x64x128xf32>
    %52 = arith.truncf %51 : vector<2x64x128xf32> to vector<2x64x128xbf16>
    %53 = vector.extract_strided_slice %17 {offsets = [0, 64, 0], sizes = [2, 64, 128], strides = [1, 1, 1]} : vector<2x128x128xf32> to vector<2x64x128xf32>
    %54 = vector.broadcast %21 : vector<1x64x128xf32> to vector<2x64x128xf32>
    %55 = arith.addf %53, %54 : vector<2x64x128xf32>
    %56 = arith.truncf %55 : vector<2x64x128xf32> to vector<2x64x128xbf16>
    %57 = vector.extract_strided_slice %19 {offsets = [0, 64, 0], sizes = [2, 64, 128], strides = [1, 1, 1]} : vector<2x128x128xf32> to vector<2x64x128xf32>
    %58 = arith.truncf %57 : vector<2x64x128xf32> to vector<2x64x128xbf16>
    %cst_28 = arith.constant dense<0.000000e+00> : vector<2x64x64xf32>
    %59 = tpu.matmul %52, %56, %cst_28 {dimension_numbers = #tpu.dot_dimension_numbers<[2], [2], [1], [1], [0, 0, 0, 1, 1, 1], [0], [0]>} : vector<2x64x128xbf16>, vector<2x64x128xbf16>, vector<2x64x64xf32> -> vector<2x64x64xf32>
    %cst_29 = arith.constant dense<0xFF800000> : vector<2x64xf32>
    %60 = vector.multi_reduction <maximumf>, %59, %cst_29 [2] : vector<2x64x64xf32> to vector<2x64xf32>
    %61 = vector.shape_cast %60 : vector<2x64xf32> to vector<2x64x1xf32>
    %62 = vector.broadcast %61 : vector<2x64x1xf32> to vector<2x64x64xf32>
    %63 = arith.subf %59, %62 : vector<2x64x64xf32>
    %64 = math.exp %63 : vector<2x64x64xf32>
    %cst_30 = arith.constant dense<0.000000e+00> : vector<2x64xf32>
    %65 = vector.multi_reduction <add>, %64, %cst_30 [2] : vector<2x64x64xf32> to vector<2x64xf32>
    %66 = vector.shape_cast %65 : vector<2x64xf32> to vector<2x64x1xf32>
    %67 = tpu.reciprocal %66 {approx = true} : vector<2x64x1xf32> -> vector<2x64x1xf32>
    %68 = vector.broadcast %67 : vector<2x64x1xf32> to vector<2x64x64xf32>
    %69 = arith.mulf %64, %68 : vector<2x64x64xf32>
    %70 = arith.truncf %69 : vector<2x64x64xf32> to vector<2x64x64xbf16>
    %cst_31 = arith.constant dense<0.000000e+00> : vector<2x64x128xf32>
    %71 = tpu.matmul %70, %58, %cst_31 {dimension_numbers = #tpu.dot_dimension_numbers<[2], [1], [1], [2], [0, 0, 0, 1, 1, 2], [0], [0]>} : vector<2x64x64xbf16>, vector<2x64x128xbf16>, vector<2x64x128xf32> -> vector<2x64x128xf32>
    %72 = vector.extract_strided_slice %71 {offsets = [0, 0, 0], sizes = [1, 64, 128], strides = [1, 1, 1]} : vector<2x64x128xf32> to vector<1x64x128xf32>
    %73 = vector.shape_cast %72 : vector<1x64x128xf32> to vector<64x128xf32>
    %74 = vector.extract_strided_slice %71 {offsets = [1, 0, 0], sizes = [1, 64, 128], strides = [1, 1, 1]} : vector<2x64x128xf32> to vector<1x64x128xf32>
    %75 = vector.shape_cast %74 : vector<1x64x128xf32> to vector<64x128xf32>
    %76 = tpu.concatenate %73, %75 in 1 : vector<64x128xf32>, vector<64x128xf32> -> vector<64x256xf32>
    %c0_32 = arith.constant 0 : index
    %c0_33 = arith.constant 0 : index
    %77 = vector.load %arg5[%c0_32, %c0_33] : memref<16x64xbf16, #tpu.memory_space<vmem>>, vector<16x64xbf16>
    %78 = arith.truncf %76 : vector<64x256xf32> to vector<64x256xbf16>
    %cst_34 = arith.constant dense<0.000000e+00> : vector<16x256xf32>
    %79 = tpu.matmul %77, %78, %cst_34 {dimension_numbers = #tpu.dot_dimension_numbers<[1], [0], [0], [1], [0, 0, 1, 1], [], []>} : vector<16x64xbf16>, vector<64x256xbf16>, vector<16x256xf32> -> vector<16x256xf32>
    %80 = tpu.concatenate %50, %79 in 0 : vector<16x256xf32>, vector<16x256xf32> -> vector<32x256xf32>
    %c0_35 = arith.constant 0 : index
    %c0_36 = arith.constant 0 : index
    %81 = vector.load %arg12[%c0_35, %c0_36] : memref<1x256xf32, #tpu.memory_space<vmem>>, vector<1x256xf32>
    %82 = vector.broadcast %81 : vector<1x256xf32> to vector<32x256xf32>
    %83 = arith.mulf %80, %82 : vector<32x256xf32>
    %c0_37 = arith.constant 0 : index
    %c0_38 = arith.constant 0 : index
    %84 = vector.load %arg13[%c0_37, %c0_38] : memref<1x256xf32, #tpu.memory_space<vmem>>, vector<1x256xf32>
    %85 = vector.broadcast %84 : vector<1x256xf32> to vector<32x256xf32>
    %86 = arith.addf %83, %85 : vector<32x256xf32>
    %cst_39 = arith.constant 0.000000e+00 : f32
    %87 = vector.broadcast %cst_39 : f32 to vector<32x256xf32>
    %88 = arith.maximumf %86, %87 : vector<32x256xf32>
    %89 = arith.truncf %88 : vector<32x256xf32> to vector<32x256xbf16>
    %c0_40 = arith.constant 0 : index
    %c0_41 = arith.constant 0 : index
    %90 = vector.load %arg14[%c0_40, %c0_41] : memref<256x128xbf16, #tpu.memory_space<vmem>>, vector<256x128xbf16>
    %cst_42 = arith.constant dense<0.000000e+00> : vector<32x128xf32>
    %91 = tpu.matmul %89, %90, %cst_42 {dimension_numbers = #tpu.dot_dimension_numbers<[1], [0], [0], [1], [0, 0, 1, 1], [], []>} : vector<32x256xbf16>, vector<256x128xbf16>, vector<32x128xf32> -> vector<32x128xf32>
    %c0_43 = arith.constant 0 : index
    %c0_44 = arith.constant 0 : index
    %92 = vector.load %arg15[%c0_43, %c0_44] : memref<1x128xf32, #tpu.memory_space<vmem>>, vector<1x128xf32>
    %93 = vector.broadcast %92 : vector<1x128xf32> to vector<32x128xf32>
    %94 = arith.addf %91, %93 : vector<32x128xf32>
    %c0_45 = arith.constant 0 : index
    %c0_46 = arith.constant 0 : index
    %95 = vector.load %arg2[%c0_45, %c0_46] : memref<32x576xbf16, #tpu.memory_space<vmem>>, vector<32x576xbf16>
    %c0_47 = arith.constant 0 : index
    %c0_48 = arith.constant 0 : index
    %96 = vector.load %arg3[%c0_47, %c0_48] : memref<576x128xbf16, #tpu.memory_space<vmem>>, vector<576x128xbf16>
    %cst_49 = arith.constant dense<0.000000e+00> : vector<32x128xf32>
    %97 = tpu.matmul %95, %96, %cst_49 {dimension_numbers = #tpu.dot_dimension_numbers<[1], [0], [0], [1], [0, 0, 1, 1], [], []>} : vector<32x576xbf16>, vector<576x128xbf16>, vector<32x128xf32> -> vector<32x128xf32>
    %c0_50 = arith.constant 0 : index
    %c0_51 = arith.constant 0 : index
    %98 = vector.load %arg4[%c0_50, %c0_51] : memref<1x128xf32, #tpu.memory_space<vmem>>, vector<1x128xf32>
    %99 = vector.broadcast %98 : vector<1x128xf32> to vector<32x128xf32>
    %100 = arith.addf %97, %99 : vector<32x128xf32>
    %cst_52 = arith.constant 0.000000e+00 : f32
    %101 = vector.broadcast %cst_52 : f32 to vector<32x128xf32>
    %102 = arith.maximumf %100, %101 : vector<32x128xf32>
    %103 = arith.addf %94, %102 : vector<32x128xf32>
    %cst_53 = arith.constant 0.000000e+00 : f32
    %104 = vector.broadcast %cst_53 : f32 to vector<32x128xf32>
    %105 = arith.maximumf %103, %104 : vector<32x128xf32>
    %106 = arith.truncf %105 : vector<32x128xf32> to vector<32x128xbf16>
    %c0_54 = arith.constant 0 : index
    %c0_55 = arith.constant 0 : index
    %107 = vector.load %arg16[%c0_54, %c0_55] : memref<32x128xbf16, #tpu.memory_space<vmem>>, vector<32x128xbf16>
    tpu.vector_store %arg16[%c0_54, %c0_55], %106 {strides = array<i32>} : memref<32x128xbf16, #tpu.memory_space<vmem>>, vector<32x128xbf16>,
    return
  }
  func.func @transform_0(%arg0: i32) -> (i32, i32) {
    %c0_i32 = arith.constant 0 : i32
    %c0_i32_0 = arith.constant 0 : i32
    return %arg0, %c0_i32 : i32, i32
  }
  func.func @transform_1(%arg0: i32) -> (i32, i32) {
    %c0_i32 = arith.constant 0 : i32
    %c0_i32_0 = arith.constant 0 : i32
    return %arg0, %c0_i32 : i32, i32
  }
  func.func @transform_2(%arg0: i32) -> (i32, i32) {
    %c0_i32 = arith.constant 0 : i32
    %c0_i32_0 = arith.constant 0 : i32
    %c0_i32_1 = arith.constant 0 : i32
    return %c0_i32, %c0_i32_0 : i32, i32
  }
  func.func @transform_3(%arg0: i32) -> (i32, i32) {
    %c0_i32 = arith.constant 0 : i32
    %c0_i32_0 = arith.constant 0 : i32
    %c0_i32_1 = arith.constant 0 : i32
    return %c0_i32, %c0_i32_0 : i32, i32
  }
  func.func @transform_4(%arg0: i32) -> (i32, i32) {
    %c0_i32 = arith.constant 0 : i32
    %c0_i32_0 = arith.constant 0 : i32
    %c0_i32_1 = arith.constant 0 : i32
    return %c0_i32, %c0_i32_0 : i32, i32
  }
  func.func @transform_5(%arg0: i32) -> (i32, i32) {
    %c0_i32 = arith.constant 0 : i32
    %c0_i32_0 = arith.constant 0 : i32
    %c0_i32_1 = arith.constant 0 : i32
    return %c0_i32, %c0_i32_0 : i32, i32
  }
  func.func @transform_6(%arg0: i32) -> (i32, i32) {
    %c0_i32 = arith.constant 0 : i32
    %c0_i32_0 = arith.constant 0 : i32
    %c0_i32_1 = arith.constant 0 : i32
    return %c0_i32, %c0_i32_0 : i32, i32
  }
  func.func @transform_7(%arg0: i32) -> (i32, i32, i32) {
    %c0_i32 = arith.constant 0 : i32
    %c0_i32_0 = arith.constant 0 : i32
    %c0_i32_1 = arith.constant 0 : i32
    %c0_i32_2 = arith.constant 0 : i32
    return %c0_i32, %c0_i32_0, %c0_i32_1 : i32, i32, i32
  }
  func.func @transform_8(%arg0: i32) -> (i32, i32, i32) {
    %c0_i32 = arith.constant 0 : i32
    %c0_i32_0 = arith.constant 0 : i32
    %c0_i32_1 = arith.constant 0 : i32
    %c0_i32_2 = arith.constant 0 : i32
    return %c0_i32, %c0_i32_0, %c0_i32_1 : i32, i32, i32
  }
  func.func @transform_9(%arg0: i32) -> (i32, i32, i32) {
    %c0_i32 = arith.constant 0 : i32
    %c0_i32_0 = arith.constant 0 : i32
    %c0_i32_1 = arith.constant 0 : i32
    %c0_i32_2 = arith.constant 0 : i32
    return %c0_i32, %c0_i32_0, %c0_i32_1 : i32, i32, i32
  }
  func.func @transform_10(%arg0: i32) -> (i32, i32) {
    %c0_i32 = arith.constant 0 : i32
    %c0_i32_0 = arith.constant 0 : i32
    %c0_i32_1 = arith.constant 0 : i32
    return %c0_i32, %c0_i32_0 : i32, i32
  }
  func.func @transform_11(%arg0: i32) -> (i32, i32) {
    %c0_i32 = arith.constant 0 : i32
    %c0_i32_0 = arith.constant 0 : i32
    %c0_i32_1 = arith.constant 0 : i32
    return %c0_i32, %c0_i32_0 : i32, i32
  }
  func.func @transform_12(%arg0: i32) -> (i32, i32) {
    %c0_i32 = arith.constant 0 : i32
    %c0_i32_0 = arith.constant 0 : i32
    %c0_i32_1 = arith.constant 0 : i32
    return %c0_i32, %c0_i32_0 : i32, i32
  }
  func.func @transform_13(%arg0: i32) -> (i32, i32) {
    %c0_i32 = arith.constant 0 : i32
    %c0_i32_0 = arith.constant 0 : i32
    %c0_i32_1 = arith.constant 0 : i32
    return %c0_i32, %c0_i32_0 : i32, i32
  }
  func.func @transform_14(%arg0: i32) -> (i32, i32) {
    %c0_i32 = arith.constant 0 : i32
    %c0_i32_0 = arith.constant 0 : i32
    %c0_i32_1 = arith.constant 0 : i32
    return %c0_i32, %c0_i32_0 : i32, i32
  }
  func.func @transform_15(%arg0: i32) -> (i32, i32) {
    %c0_i32 = arith.constant 0 : i32
    %c0_i32_0 = arith.constant 0 : i32
    return %arg0, %c0_i32 : i32, i32
  }
}

</mosaic_0001>

<bundles_post_ra>
// kernel: tpu_custom_call.1
= control target key start
LH: loop header
LB: loop body
LE: loop exit
PB: predicated region body
PF: predicated region fallthrough
CT: control target
= control target key end

     0   :  { %20 = vsyncpa [#allocation3], 0  ;;  %s5415_s0 = inlined_call_operand.vmem [shape: bf16[128,64], index: 0, kind: input, shape index: {}]   ;;  %s5416_s1 = inlined_call_operand.vmem [shape: bf16[32,576], index: 1, kind: input, shape index: {}]   ;;  %s5417_s2 = inlined_call_operand.hbm [shape: bf16[576,128], index: 2, kind: input, shape index: {}]   ;;  %s5418_s3 = inlined_call_operand.vmem [shape: f32[1,128], index: 3, kind: input, shape index: {}]   ;;  %s5419_s4 = inlined_call_operand.vmem [shape: bf16[16,64], index: 4, kind: input, shape index: {}]   ;;  %s5420_s5 = inlined_call_operand.hbm [shape: bf16[64,128], index: 5, kind: input, shape index: {}]   ;;  %s5421_s6 = inlined_call_operand.vmem [shape: f32[1,128], index: 6, kind: input, shape index: {}]   ;;  %s5422_s7 = inlined_call_operand.hbm [shape: bf16[2,128,128], index: 7, kind: input, shape index: {}]   ;;  %s5423_s8 = inlined_call_operand.hbm [shape: bf16[2,128,128], index: 8, kind: input, shape index: {}]   ;;  %s5424_s9 = inlined_call_operand.hbm [shape: bf16[2,128,128], index: 9, kind: input, shape index: {}]   ;;  %s5425_s10 = inlined_call_operand.hbm [shape: f32[64,128], index: 10, kind: input, shape index: {}]   ;;  %s5426_s11 = inlined_call_operand.vmem [shape: f32[1,256], index: 11, kind: input, shape index: {}]   ;;  %s5427_s12 = inlined_call_operand.vmem [shape: f32[1,256], index: 12, kind: input, shape index: {}]   ;;  %s5428_s13 = inlined_call_operand.hbm [shape: bf16[256,128], index: 13, kind: input, shape index: {}]   ;;  %s5429_s14 = inlined_call_operand.vmem [shape: f32[1,128], index: 14, kind: input, shape index: {}]   ;;  %s5430_s15 = inlined_call_operand.hbm [shape: bf16[32,128], index: 15, kind: output, shape index: {}]  }
   0x1   :  { %21 = vsyncpa [#allocation6], 0 }
   0x2   :  { %22 = vsyncpa [#allocation9], 0 }
   0x3   :  { %23 = vsyncpa [#allocation12], 0 }
   0x4   :  { %24 = vsyncpa [#allocation4], 0  ;;  %s4549_s18 = smov [#allocation5]   ;;  %s4550_s20 = smov [#allocation8]  }
   0x5   :  { %s50_s19 = sshll.u32 %s4549_s18, 4  ;;  %s76_s21 = sshll.u32 %s4550_s20, 4  ;;  %s51_s19 = int_to_ptr.vmem [resolvable:$true] %s50_s19  ;;  %s77_s21 = int_to_ptr.vmem [resolvable:$true] %s76_s21 }
   0x6   :  { %s4387_s22 = scalar_lea.vmem %s51_s19, 512  ;;  %p4392_p1 = scmp.lt.s32.totalorder %s51_s19, %s51_s19 }
   0x7   :  { %p4388_p0 = scmp.ne.s32.totalorder %s51_s19, %s4387_s22  ;;  %p4393_p2 = scmp.lt.s32.totalorder %s4387_s22, %s4387_s22 }
   0x9   :  { %p4394_p3 = por %p4393_p2, %p4392_p1 }
   0xb   :  { %p4395_p4 = pnand %p4394_p3, %p4388_p0 }
   0xd   :  { %4398 = shalt.err (!%p4395_p4)
}
   0xe   :  { %s4551_s23 = smov 64   ;;  %s4552_s24 = smov 4  }
   0xf   :  { %56 = dma.hbm_to_vmem [thread:$0]  %s5420_s5, 512, %s51_s19, [#allocation6], %s4551_s23, %s4551_s23, %s4552_s24  }
  0x10   :  { %s4407_s27 = scalar_lea.vmem %s77_s21, 2048  ;;  %p4412_p6 = scmp.lt.s32.totalorder %s77_s21, %s77_s21 }
  0x11   :  { %p4408_p5 = scmp.ne.s32.totalorder %s77_s21, %s4407_s27  ;;  %p4413_p7 = scmp.lt.s32.totalorder %s4407_s27, %s4407_s27 }
  0x13   :  { %p4414_p8 = por %p4413_p7, %p4412_p6 }
  0x15   :  { %p4415_p9 = pnand %p4414_p8, %p4408_p5 }
  0x17   :  { %4418 = shalt.err (!%p4415_p9)
}
  0x18   :  { %82 = dma.hbm_to_vmem [thread:$0]  %s5423_s8, 2048, %s77_s21, [#allocation9], %s4551_s23, %s4551_s23, %s4552_s24  }
  0x19   :  { %s4553_s30 = smov [#allocation11]  }
  0x1a   :  { %s100_s16 = sshll.u32 %s4553_s30, 4  ;;  %s101_s16 = int_to_ptr.vmem [resolvable:$true] %s100_s16 }
  0x1b   :  { %s4427_s17 = scalar_lea.vmem %s101_s16, 1024  ;;  %p4432_p11 = scmp.lt.s32.totalorder %s101_s16, %s101_s16 }
  0x1c   :  { %p4428_p10 = scmp.ne.s32.totalorder %s101_s16, %s4427_s17  ;;  %p4433_p12 = scmp.lt.s32.totalorder %s4427_s17, %s4427_s17 }
  0x1e   :  { %p4434_p13 = por %p4433_p12, %p4432_p11 }
  0x20   :  { %p4435_p0 = pnand %p4434_p13, %p4428_p10 }
  0x22   :  { %4438 = shalt.err (!%p4435_p0)
}
  0x23   :  { %s4554_s5 = smov 128   ;;  %s4555_s18 = smov 8  }
  0x24   :  { %106 = dma.hbm_to_vmem [thread:$0]  %s5425_s10, 1024, %s101_s16, [#allocation12], %s4554_s5, %s4554_s5, %s4555_s18  }
  0x25   :  { %s4556_s22 = smov [#allocation2]   ;;  %s4557_s8 = smov [#allocation7]  }
  0x26   :  { %s34_s25 = sshll.u32 %s4556_s22, 4  ;;  %s64_s21 = sshll.u32 %s4557_s8, 4  ;;  %s35_s25 = int_to_ptr.vmem [resolvable:$true] %s34_s25  ;;  %s65_s21 = int_to_ptr.vmem [resolvable:$true] %s64_s21 }
  0x27   :  { %s4447_s26 = scalar_lea.vmem %s35_s25, 4608  ;;  %p4452_p2 = scmp.lt.s32.totalorder %s35_s25, %s35_s25 }
  0x28   :  { %p4448_p1 = scmp.ne.s32.totalorder %s35_s25, %s4447_s26  ;;  %p4453_p3 = scmp.lt.s32.totalorder %s4447_s26, %s4447_s26 }
  0x2a   :  { %p4454_p4 = por %p4453_p3, %p4452_p2 }
  0x2c   :  { %p4455_p5 = pnand %p4454_p4, %p4448_p1 }
  0x2e   :  { %4458 = shalt.err (!%p4455_p5)
}
  0x2f   :  { %40 = dma.hbm_to_vmem [thread:$0]  %s5417_s2, 4608, %s35_s25, [#allocation3], %s4551_s23, %s4551_s23, %s4552_s24  }
  0x30   :  { %s4467_s10 = scalar_lea.vmem %s65_s21, 2048  ;;  %p4472_p7 = scmp.lt.s32.totalorder %s65_s21, %s65_s21 }
  0x31   :  { %p4468_p6 = scmp.ne.s32.totalorder %s65_s21, %s4467_s10  ;;  %p4473_p8 = scmp.lt.s32.totalorder %s4467_s10, %s4467_s10 }
  0x33   :  { %p4474_p9 = por %p4473_p8, %p4472_p7 }
  0x35   :  { %p4475_p10 = pnand %p4474_p9, %p4468_p6 }
  0x37   :  { %4478 = shalt.err (!%p4475_p10)
}
  0x38   :  { %70 = dma.hbm_to_vmem [thread:$0]  %s5422_s7, 2048, %s65_s21, [#allocation6], %s4551_s23, %s4551_s23, %s4552_s24  }
  0x39   :  { %s4558_s16 = smov [#allocation10]   ;;  %s4559_s5 = smov [#allocation13]  }
  0x3a   :  { %s88_s17 = sshll.u32 %s4558_s16, 4  ;;  %s116_s2 = sshll.u32 %s4559_s5, 4  ;;  %s89_s17 = int_to_ptr.vmem [resolvable:$true] %s88_s17  ;;  %s117_s2 = int_to_ptr.vmem [resolvable:$true] %s116_s2 }
  0x3b   :  { %s4487_s18 = scalar_lea.vmem %s89_s17, 2048  ;;  %p4492_p12 = scmp.lt.s32.totalorder %s89_s17, %s89_s17 }
  0x3c   :  { %p4488_p11 = scmp.ne.s32.totalorder %s89_s17, %s4487_s18  ;;  %p4493_p13 = scmp.lt.s32.totalorder %s4487_s18, %s4487_s18 }
  0x3e   :  { %p4494_p0 = por %p4493_p13, %p4492_p12 }
  0x40   :  { %p4495_p1 = pnand %p4494_p0, %p4488_p11 }
  0x42   :  { %4498 = shalt.err (!%p4495_p1)
}
  0x43   :  { %94 = dma.hbm_to_vmem [thread:$0]  %s5424_s9, 2048, %s89_s17, [#allocation9], %s4551_s23, %s4551_s23, %s4552_s24  }
  0x44   :  { %s4507_s7 = scalar_lea.vmem %s117_s2, 2048  ;;  %p4512_p3 = scmp.lt.s32.totalorder %s117_s2, %s117_s2 }
  0x45   :  { %p4508_p2 = scmp.ne.s32.totalorder %s117_s2, %s4507_s7  ;;  %p4513_p4 = scmp.lt.s32.totalorder %s4507_s7, %s4507_s7 }
  0x47   :  { %p4514_p5 = por %p4513_p4, %p4512_p3 }
  0x49   :  { %p4515_p6 = pnand %p4514_p5, %p4508_p2 }
  0x4b   :  { %4518 = shalt.err (!%p4515_p6)
}
  0x4c   :  { %122 = dma.hbm_to_vmem [thread:$0]  %s5428_s13, 2048, %s117_s2, [#allocation12], %s4551_s23, %s4551_s23, %s4552_s24  }
  0x4d   :  { %4539 = dma.done.wait [#allocation3], 4608  }
  0x4e   :  { %4540 = vsyncadd [#allocation3], 4294962688 }
  0x4f   :  { %4541 = dma.done.wait [#allocation6], 2560  }
  0x50   :  { %4542 = vsyncadd [#allocation6], 4294964736 }
  0x51   :  { %4543 = dma.done.wait [#allocation9], 4096  }
  0x52   :  { %4544 = vsyncadd [#allocation9], 4294963200 }
  0x53   :  { %4545 = dma.done.wait [#allocation12], 3072  }
  0x54   :  { %4546 = vsyncadd [#allocation12], 4294964224  ;;  %v4124_v0 = vld [vmem:[#allocation5 + $0x18] sm:$0xff]   ;;  %v4125_v1 = vld [vmem:[#allocation5 + $0x10] sm:$0xff]   ;;  %vm242_vm0 = vcmask 523264  }
  0x55   :  { %3755 = vmatprep.subr.bf16.mxu0 %v4124_v0  ;;  %v4126_v2 = vld [vmem:[#allocation5 + $0x8] sm:$0xff]   ;;  %v4128_v3 = vld [vmem:[%s5415_s0] sm:$0xff]   ;;  %v4136_v6 = vld [vmem:[#allocation7 + $0x38] sm:$0xff]  }
  0x56   :  { %3756 = vmatpush3.bf16.msra.mxu0 %v4124_v0  ;;  %3763 = vmatprep.mubr.msk.bf16.mxu0 %vm242_vm0, %v4128_v3  ;;  %v4127_v4 = vld [vmem:[#allocation5] sm:$0xff]   ;;  %v4129_v5 = vld [vmem:[%s5415_s0 + $0x8] sm:$0xff]   ;;  %v4137_v7 = vld [vmem:[#allocation7 + $0x78] sm:$0xff]  }
  0x57   :  { %3757 = vmatprep.subr.bf16.mxu0 %v4125_v1  ;;  %3779 = vmatprep.subr.bf16.mxu1 %v4136_v6  ;;  %v4138_v8 = vld [vmem:[#allocation7 + $0x30] sm:$0xff]   ;;  %v4140_v11 = vld [vmem:[#allocation7 + $0x28] sm:$0xff]   ;;  %v4131_v12 = vld [vmem:[%s5415_s0 + $0x18] sm:$0xff]  }
  0x58   :  { %v4130_v9 = vld [vmem:[%s5415_s0 + $0x10] sm:$0xff]   ;;  %3780 = vmatpush3.bf16.msra.mxu1 %v4136_v6  ;;  %v4141_v13 = vld [vmem:[#allocation7 + $0x68] sm:$0xff]   ;;  %v4132_v14 = vld [vmem:[%s5415_s0 + $0x20] sm:$0xff]  }
  0x59   :  { %3781 = vmatprep.subr.bf16.mxu1 %v4138_v8  ;;  %v4139_v10 = vld [vmem:[#allocation7 + $0x70] sm:$0xff]   ;;  %v4142_v15 = vld [vmem:[#allocation7 + $0x20] sm:$0xff]   ;;  %v4144_v17 = vld [vmem:[#allocation7 + $0x18] sm:$0xff]  }
  0x5a   :  { %3758 = vmatpush3.bf16.msra.mxu0 %v4125_v1  ;;  %v4143_v16 = vld [vmem:[#allocation7 + $0x60] sm:$0xff]   ;;  %v4145_v18 = vld [vmem:[#allocation7 + $0x58] sm:$0xff]   ;;  %v4133_v19 = vld [vmem:[%s5415_s0 + $0x28] sm:$0xff]  }
  0x5b   :  { %3759 = vmatprep.subr.bf16.mxu0 %v4126_v2  ;;  %v4134_v20 = vld [vmem:[%s5415_s0 + $0x30] sm:$0xff]   ;;  %v4135_v21 = vld [vmem:[%s5415_s0 + $0x38] sm:$0xff]   ;;  %v4148_v24 = vld [vmem:[#allocation7 + $0x8] sm:$0xff]  }
  0x5c   :  { %3782 = vmatpush3.bf16.msra.mxu1 %v4138_v8  ;;  %v4146_v22 = vld [vmem:[#allocation7 + $0x10] sm:$0xff]   ;;  %v4149_v25 = vld [vmem:[#allocation7 + $0x48] sm:$0xff]   ;;  %v4150_v26 = vld [vmem:[#allocation7] sm:$0xff]  }
  0x5d   :  { %3783 = vmatprep.subr.bf16.mxu1 %v4140_v11  ;;  %v4147_v23 = vld [vmem:[#allocation7 + $0x50] sm:$0xff]   ;;  %v4151_v27 = vld [vmem:[#allocation7 + $0x40] sm:$0xff]   ;;  %v4152_v28 = vld [vmem:[#allocation8 + $0x38] sm:$0xff]  }
  0x5e   :  { %3760 = vmatpush3.bf16.msra.mxu0 %v4126_v2  ;;  %v4153_v29 = vld [vmem:[#allocation8 + $0x78] sm:$0xff]   ;;  %v4716_v32 = vld [vmem:[%s5421_s6] ss:$0 sm:$0xff]  ;;  %v4154_v48 = vld [vmem:[#allocation8 + $0x30] sm:$0xff]  }
  0x5f   :  { %3761 = vmatprep.subr.bf16.mxu0 %v4127_v4  ;;  %v4155_v49 = vld [vmem:[#allocation8 + $0x70] sm:$0xff]   ;;  %v4156_v57 = vld [vmem:[#allocation8 + $0x28] sm:$0xff]   ;;  %v4158_v2 = vld [vmem:[#allocation8 + $0x20] sm:$0xff]  }
  0x60   :  { %3784 = vmatpush3.bf16.msra.mxu1 %v4140_v11  ;;  %v4157_v58 = vld [vmem:[#allocation8 + $0x68] sm:$0xff]   ;;  %v4159_v3 = vld [vmem:[#allocation8 + $0x60] sm:$0xff]   ;;  %v4160_v11 = vld [vmem:[#allocation8 + $0x18] sm:$0xff]  }
  0x61   :  { %3785 = vmatprep.subr.bf16.mxu1 %v4142_v15 }
  0x62   :  { %3762 = vmatpush3.bf16.msra.mxu0 %v4127_v4 }
  0x63   :  { %3811 = vmatprep.subr.bf16.mxu0 %v4137_v7 }
  0x64   :  { %3786 = vmatpush3.bf16.msra.mxu1 %v4142_v15 }
  0x65   :  { %3764 = vmatmul.mubr.msk.bf16.vlgmr.msra.gmra.mxu0 %vm242_vm0, %v4129_v5  ;;  %3787 = vmatprep.subr.bf16.mxu1 %v4144_v17 }
  0x66   :  { %3767 = vmatprep.mubr.msk.bf16.mxu0 %vm242_vm0, %v4130_v9  ;;  %3812 = vmatpush3.bf16.msra.mxu0 %v4137_v7 }
  0x67   :  { %3813 = vmatprep.subr.bf16.mxu0 %v4139_v10 }
  0x68   :  { %3788 = vmatpush3.bf16.msra.mxu1 %v4144_v17 }
  0x69   :  { %3789 = vmatprep.subr.bf16.mxu1 %v4146_v22 }
  0x6a   :  { %3814 = vmatpush3.bf16.msra.mxu0 %v4139_v10 }
  0x6b   :  { %3815 = vmatprep.subr.bf16.mxu0 %v4141_v13 }
  0x6c   :  { %3790 = vmatpush3.bf16.msra.mxu1 %v4146_v22 }
  0x6d   :  { %3768 = vmatmul.mubr.msk.bf16.gmra.mxu0 %vm242_vm0, %v4131_v12  ;;  %3791 = vmatprep.subr.bf16.mxu1 %v4148_v24  ;;  %v4161_v12 = vld [vmem:[#allocation8 + $0x58] sm:$0xff]  }
  0x6e   :  { %3771 = vmatprep.mubr.msk.bf16.mxu0 %vm242_vm0, %v4132_v14  ;;  %3816 = vmatpush3.bf16.msra.mxu0 %v4141_v13 }
  0x6f   :  { %3817 = vmatprep.subr.bf16.mxu0 %v4143_v16 }
  0x70   :  { %3792 = vmatpush3.bf16.msra.mxu1 %v4148_v24 }
  0x71   :  { %3793 = vmatprep.subr.bf16.mxu1 %v4150_v26 }
  0x72   :  { %3818 = vmatpush3.bf16.msra.mxu0 %v4143_v16 }
  0x73   :  { %3819 = vmatprep.subr.bf16.mxu0 %v4145_v18 }
  0x74   :  { %3794 = vmatpush3.bf16.msra.mxu1 %v4150_v26 }
  0x75   :  { %3772 = vmatmul.mubr.msk.bf16.gmra.mxu0 %vm242_vm0, %v4133_v19  ;;  %3843 = vmatprep.subr.bf16.mxu1 %v4152_v28 }
  0x76   :  { %3775 = vmatprep.mubr.msk.bf16.mxu0 %vm242_vm0, %v4134_v20  ;;  %3820 = vmatpush3.bf16.msra.mxu0 %v4145_v18  ;;  %v4162_v20 = vld [vmem:[#allocation8 + $0x10] sm:$0xff]  }
  0x77   :  { %3821 = vmatprep.subr.bf16.mxu0 %v4147_v23 }
  0x7a   :  { %3822 = vmatpush3.bf16.msra.mxu0 %v4147_v23 }
  0x7b   :  { %3823 = vmatprep.subr.bf16.mxu0 %v4149_v25 }
  0x7d   :  { %3776 = vmatmul.mubr.msk.bf16.gmra.mxu0 %vm242_vm0, %v4135_v21  ;;  %v4163_v21 = vld [vmem:[#allocation8 + $0x50] sm:$0xff]  }
  0x7e   :  { %3824 = vmatpush3.bf16.msra.mxu0 %v4149_v25 }
  0x7f   :  { %3825 = vmatprep.subr.bf16.mxu0 %v4151_v27 }
  0x82   :  { %3826 = vmatpush3.bf16.msra.mxu0 %v4151_v27 }
  0x83   :  { %3875 = vmatprep.subr.bf16.mxu0 %v4153_v29 }
 0x125   :  { %v3765_v30 = vpop.f32.mrf.mxu0 }
 0x126   :  { %v310_v36 = vadd.f32 %v3765_v30, %v4716_v32 }
 0x127   :  { %v301_v31 = vpop.f32.mrf.mxu0 }
 0x128   :  { %v302_v34 = vadd.f32 %v4716_v32, %v301_v31  ;;  %v366_v43 = vmax.f32 %v310_v36, 0.0  ;;  %v4167_v36 = vld [vmem:[#allocation8 + $0x40] sm:$0xff]  }
 0x129   :  { %v3766_v33 = vpop.f32.mrf.mxu0 }
 0x12a   :  { %v313_v35 = vadd.f32 %v3766_v33, %v4716_v32  ;;  %v364_v41 = vmax.f32 %v302_v34, 0.0 }
 0x12b   :  { %v304_v37 = vpop.f32.mrf.mxu0 }
 0x12c   :  { %v305_v38 = vadd.f32 %v4716_v32, %v304_v37  ;;  %v367_v39 = vmax.f32 %v313_v35, 0.0  ;;  %v4168_v37 = vld [vmem:[#allocation10 + $0x38] sm:$0xff]  }
 0x12d   :  { %v3769_v40 = vpop.f32.mrf.mxu0 }
 0x12e   :  { %v365_v42 = vmax.f32 %v305_v38, 0.0  ;;  %v4724_v46 = vpack.c.bf16 %v367_v39, %v366_v43  ;;  %v326_v52 = vadd.f32 %v3769_v40, %v4716_v32  ;;  %v4169_v38 = vld [vmem:[#allocation10 + $0x78] sm:$0xff]   ;;  %v4170_v39 = vld [vmem:[#allocation10 + $0x30] sm:$0xff]   ;;  %v4174_v43 = vld [vmem:[#allocation10 + $0x20] sm:$0xff]  }
 0x12f   :  { %v317_v44 = vpop.f32.mrf.mxu0  ;;  %v4171_v40 = vld [vmem:[#allocation10 + $0x70] sm:$0xff]  }
 0x130   :  { %v4722_v45 = vpack.c.bf16 %v365_v42, %v364_v41  ;;  %v318_v50 = vadd.f32 %v4716_v32, %v317_v44  ;;  %v370_v61 = vmax.f32 %v326_v52, 0.0  ;;  %v4172_v41 = vld [vmem:[#allocation10 + $0x28] sm:$0xff]   ;;  %v4175_v44 = vld [vmem:[#allocation10 + $0x60] sm:$0xff]  }
 0x131   :  { %v3770_v47 = vpop.f32.mrf.mxu0  ;;  %v4173_v42 = vld [vmem:[#allocation10 + $0x68] sm:$0xff]  }
 0x132   :  { %v329_v51 = vadd.f32 %v3770_v47, %v4716_v32  ;;  %3795 = vmatprep.mubr.bf16.mxu1 %v4722_v45  ;;  %3827 = vmatprep.mubr.bf16.mxu0 %v4722_v45  ;;  %v368_v59 = vmax.f32 %v318_v50, 0.0  ;;  %v4176_v47 = vld [vmem:[#allocation10 + $0x18] sm:$0xff]   ;;  %v4179_v50 = vld [vmem:[#allocation10 + $0x50] sm:$0xff]   ;;  %v4181_v52 = vld [vmem:[#allocation10 + $0x48] sm:$0xff]  }
 0x133   :  { %v320_v53 = vpop.f32.mrf.mxu0  ;;  %3796 = vmatmul.mubr.bf16.vlgmr.msra.gmra.mxu1 %v4724_v46  ;;  %3828 = vmatmul.mubr.bf16.vlgmr.msra.gmra.mxu0 %v4724_v46 }
 0x134   :  { %v321_v54 = vadd.f32 %v4716_v32, %v320_v53  ;;  %3844 = vmatpush3.bf16.msra.mxu1 %v4152_v28  ;;  %3876 = vmatpush3.bf16.msra.mxu0 %v4153_v29  ;;  %v371_v55 = vmax.f32 %v329_v51, 0.0  ;;  %v4164_v28 = vld [vmem:[#allocation8 + $0x8] sm:$0xff]   ;;  %v4182_v53 = vld [vmem:[#allocation10] sm:$0xff]  }
 0x135   :  { %v3773_v56 = vpop.f32.mrf.mxu0  ;;  %3845 = vmatprep.subr.bf16.mxu1 %v4154_v48  ;;  %3877 = vmatprep.subr.bf16.mxu0 %v4155_v49  ;;  %v4165_v29 = vld [vmem:[#allocation8 + $0x48] sm:$0xff]  }
 0x136   :  { %v369_v60 = vmax.f32 %v321_v54, 0.0  ;;  %v4736_v0 = vpack.c.bf16 %v371_v55, %v370_v61  ;;  %v342_v6 = vadd.f32 %v3773_v56, %v4716_v32  ;;  %v4180_v51 = vld [vmem:[#allocation10 + $0x8] sm:$0xff]   ;;  %v4183_v54 = vld [vmem:[#allocation10 + $0x40] sm:$0xff]  }
 0x137   :  { %v333_v62 = vpop.f32.mrf.mxu0 }
 0x138   :  { %v4734_v63 = vpack.c.bf16 %v369_v60, %v368_v59  ;;  %3846 = vmatpush3.bf16.msra.mxu1 %v4154_v48  ;;  %3878 = vmatpush3.bf16.msra.mxu0 %v4155_v49  ;;  %v334_v4 = vadd.f32 %v4716_v32, %v333_v62  ;;  %v374_v15 = vmax.f32 %v342_v6, 0.0  ;;  %v4177_v48 = vld [vmem:[#allocation10 + $0x58] sm:$0xff]   ;;  %v4178_v49 = vld [vmem:[#allocation10 + $0x10] sm:$0xff]  }
 0x139   :  { %v3774_v1 = vpop.f32.mrf.mxu0  ;;  %3847 = vmatprep.subr.bf16.mxu1 %v4156_v57  ;;  %3879 = vmatprep.subr.bf16.mxu0 %v4157_v58 }
 0x13a   :  { %v345_v5 = vadd.f32 %v3774_v1, %v4716_v32  ;;  %3799 = vmatprep.mubr.bf16.mxu1 %v4734_v63  ;;  %3831 = vmatprep.mubr.bf16.mxu0 %v4734_v63  ;;  %v372_v13 = vmax.f32 %v334_v4, 0.0 }
 0x13b   :  { %v336_v7 = vpop.f32.mrf.mxu0  ;;  %3800 = vmatmul.mubr.bf16.gmra.mxu1 %v4736_v0  ;;  %3832 = vmatmul.mubr.bf16.gmra.mxu0 %v4736_v0 }
 0x13c   :  { %v337_v8 = vadd.f32 %v4716_v32, %v336_v7  ;;  %3848 = vmatpush3.bf16.msra.mxu1 %v4156_v57  ;;  %3880 = vmatpush3.bf16.msra.mxu0 %v4157_v58  ;;  %v375_v9 = vmax.f32 %v345_v5, 0.0 }
 0x13d   :  { %v3777_v10 = vpop.f32.mrf.mxu0  ;;  %3849 = vmatprep.subr.bf16.mxu1 %v4158_v2  ;;  %3881 = vmatprep.subr.bf16.mxu0 %v4159_v3 }
 0x13e   :  { %v373_v14 = vmax.f32 %v337_v8, 0.0  ;;  %v4748_v18 = vpack.c.bf16 %v375_v9, %v374_v15  ;;  %v358_v24 = vadd.f32 %v3777_v10, %v4716_v32 }
 0x13f   :  { %v349_v16 = vpop.f32.mrf.mxu0 }
 0x140   :  { %v4746_v17 = vpack.c.bf16 %v373_v14, %v372_v13  ;;  %3850 = vmatpush3.bf16.msra.mxu1 %v4158_v2  ;;  %3882 = vmatpush3.bf16.msra.mxu0 %v4159_v3  ;;  %v350_v22 = vadd.f32 %v4716_v32, %v349_v16  ;;  %v378_v33 = vmax.f32 %v358_v24, 0.0 }
 0x141   :  { %v3778_v19 = vpop.f32.mrf.mxu0  ;;  %3851 = vmatprep.subr.bf16.mxu1 %v4160_v11  ;;  %3883 = vmatprep.subr.bf16.mxu0 %v4161_v12 }
 0x142   :  { %v361_v23 = vadd.f32 %v3778_v19, %v4716_v32  ;;  %3803 = vmatprep.mubr.bf16.mxu1 %v4746_v17  ;;  %3835 = vmatprep.mubr.bf16.mxu0 %v4746_v17  ;;  %v376_v30 = vmax.f32 %v350_v22, 0.0 }
 0x143   :  { %v352_v25 = vpop.f32.mrf.mxu0  ;;  %3804 = vmatmul.mubr.bf16.gmra.mxu1 %v4748_v18  ;;  %3836 = vmatmul.mubr.bf16.gmra.mxu0 %v4748_v18 }
 0x144   :  { %v353_v26 = vadd.f32 %v4716_v32, %v352_v25  ;;  %3852 = vmatpush3.bf16.msra.mxu1 %v4160_v11  ;;  %3884 = vmatpush3.bf16.msra.mxu0 %v4161_v12  ;;  %v379_v27 = vmax.f32 %v361_v23, 0.0  ;;  %v4166_v32 = vld [vmem:[#allocation8] sm:$0xff]  }
 0x145   :  { %3853 = vmatprep.subr.bf16.mxu1 %v4162_v20  ;;  %3885 = vmatprep.subr.bf16.mxu0 %v4163_v21 }
 0x146   :  { %v377_v31 = vmax.f32 %v353_v26, 0.0  ;;  %v4760_v35 = vpack.c.bf16 %v379_v27, %v378_v33 }
 0x148   :  { %v4758_v34 = vpack.c.bf16 %v377_v31, %v376_v30  ;;  %3854 = vmatpush3.bf16.msra.mxu1 %v4162_v20  ;;  %3886 = vmatpush3.bf16.msra.mxu0 %v4163_v21 }
 0x149   :  { %3855 = vmatprep.subr.bf16.mxu1 %v4164_v28  ;;  %3887 = vmatprep.subr.bf16.mxu0 %v4165_v29 }
 0x14a   :  { %3807 = vmatprep.mubr.bf16.mxu1 %v4758_v34  ;;  %3839 = vmatprep.mubr.bf16.mxu0 %v4758_v34 }
 0x14b   :  { %3808 = vmatmul.mubr.bf16.gmra.mxu1 %v4760_v35  ;;  %3840 = vmatmul.mubr.bf16.gmra.mxu0 %v4760_v35 }
 0x14c   :  { %3856 = vmatpush3.bf16.msra.mxu1 %v4164_v28  ;;  %3859 = vmatprep.mubr.bf16.mxu1 %v4722_v45 }
 0x14d   :  { %3888 = vmatpush3.bf16.msra.mxu0 %v4165_v29  ;;  %3891 = vmatprep.mubr.bf16.mxu0 %v4722_v45 }
 0x14e   :  { %3857 = vmatprep.subr.bf16.mxu1 %v4166_v32  ;;  %3889 = vmatprep.subr.bf16.mxu0 %v4167_v36 }
 0x150   :  { %3858 = vmatpush3.bf16.msra.mxu1 %v4166_v32 }
 0x151   :  { %3890 = vmatpush3.bf16.msra.mxu0 %v4167_v36  ;;  %3907 = vmatprep.subr.bf16.mxu1 %v4168_v37 }
 0x152   :  { %3939 = vmatprep.subr.bf16.mxu0 %v4169_v38 }
 0x153   :  { %3860 = vmatmul.mubr.bf16.vlgmr.msra.gmra.mxu1 %v4724_v46 }
 0x154   :  { %3892 = vmatmul.mubr.bf16.vlgmr.msra.gmra.mxu0 %v4724_v46  ;;  %3863 = vmatprep.mubr.bf16.mxu1 %v4734_v63 }
 0x155   :  { %3895 = vmatprep.mubr.bf16.mxu0 %v4734_v63  ;;  %3908 = vmatpush3.bf16.msra.mxu1 %v4168_v37 }
 0x156   :  { %3940 = vmatpush3.bf16.msra.mxu0 %v4169_v38  ;;  %3909 = vmatprep.subr.bf16.mxu1 %v4170_v39 }
 0x157   :  { %3941 = vmatprep.subr.bf16.mxu0 %v4171_v40 }
 0x159   :  { %3910 = vmatpush3.bf16.msra.mxu1 %v4170_v39 }
 0x15a   :  { %3942 = vmatpush3.bf16.msra.mxu0 %v4171_v40  ;;  %3911 = vmatprep.subr.bf16.mxu1 %v4172_v41 }
 0x15b   :  { %3864 = vmatmul.mubr.bf16.gmra.mxu1 %v4736_v0  ;;  %3943 = vmatprep.subr.bf16.mxu0 %v4173_v42 }
 0x15c   :  { %3896 = vmatmul.mubr.bf16.gmra.mxu0 %v4736_v0  ;;  %3867 = vmatprep.mubr.bf16.mxu1 %v4746_v17 }
 0x15d   :  { %3899 = vmatprep.mubr.bf16.mxu0 %v4746_v17  ;;  %3912 = vmatpush3.bf16.msra.mxu1 %v4172_v41 }
 0x15e   :  { %3944 = vmatpush3.bf16.msra.mxu0 %v4173_v42  ;;  %3913 = vmatprep.subr.bf16.mxu1 %v4174_v43 }
 0x15f   :  { %3945 = vmatprep.subr.bf16.mxu0 %v4175_v44 }
 0x161   :  { %3914 = vmatpush3.bf16.msra.mxu1 %v4174_v43 }
 0x162   :  { %3946 = vmatpush3.bf16.msra.mxu0 %v4175_v44  ;;  %3915 = vmatprep.subr.bf16.mxu1 %v4176_v47  ;;  %v1388_v44 = vld [vmem:[#allocation11 + $0x10] sm:$0xff] }
 0x163   :  { %3868 = vmatmul.mubr.bf16.gmra.mxu1 %v4748_v18  ;;  %3947 = vmatprep.subr.bf16.mxu0 %v4177_v48 }
 0x164   :  { %3900 = vmatmul.mubr.bf16.gmra.mxu0 %v4748_v18  ;;  %3871 = vmatprep.mubr.bf16.mxu1 %v4758_v34 }
 0x165   :  { %3903 = vmatprep.mubr.bf16.mxu0 %v4758_v34  ;;  %3916 = vmatpush3.bf16.msra.mxu1 %v4176_v47 }
 0x166   :  { %3948 = vmatpush3.bf16.msra.mxu0 %v4177_v48  ;;  %3917 = vmatprep.subr.bf16.mxu1 %v4178_v49 }
 0x167   :  { %3949 = vmatprep.subr.bf16.mxu0 %v4179_v50 }
 0x169   :  { %3918 = vmatpush3.bf16.msra.mxu1 %v4178_v49 }
 0x16a   :  { %3950 = vmatpush3.bf16.msra.mxu0 %v4179_v50  ;;  %3919 = vmatprep.subr.bf16.mxu1 %v4180_v51 }
 0x16b   :  { %3872 = vmatmul.mubr.bf16.gmra.mxu1 %v4760_v35  ;;  %3951 = vmatprep.subr.bf16.mxu0 %v4181_v52 }
 0x16c   :  { %3904 = vmatmul.mubr.bf16.gmra.mxu0 %v4760_v35  ;;  %3923 = vmatprep.mubr.bf16.mxu1 %v4722_v45 }
 0x16d   :  { %3920 = vmatpush3.bf16.msra.mxu1 %v4180_v51  ;;  %3955 = vmatprep.mubr.bf16.mxu0 %v4722_v45 }
 0x16e   :  { %3952 = vmatpush3.bf16.msra.mxu0 %v4181_v52  ;;  %3921 = vmatprep.subr.bf16.mxu1 %v4182_v53 }
 0x16f   :  { %3953 = vmatprep.subr.bf16.mxu0 %v4183_v54 }
 0x171   :  { %3922 = vmatpush3.bf16.msra.mxu1 %v4182_v53 }
 0x172   :  { %3954 = vmatpush3.bf16.msra.mxu0 %v4183_v54 }
 0x174   :  { %3924 = vmatmul.mubr.bf16.vlgmr.msra.gmra.mxu1 %v4724_v46 }
 0x175   :  { %3956 = vmatmul.mubr.bf16.vlgmr.msra.gmra.mxu0 %v4724_v46  ;;  %3927 = vmatprep.mubr.bf16.mxu1 %v4734_v63 }
 0x176   :  { %3959 = vmatprep.mubr.bf16.mxu0 %v4734_v63 }
 0x17c   :  { %3928 = vmatmul.mubr.bf16.gmra.mxu1 %v4736_v0 }
 0x17d   :  { %3960 = vmatmul.mubr.bf16.gmra.mxu0 %v4736_v0  ;;  %3931 = vmatprep.mubr.bf16.mxu1 %v4746_v17 }
 0x17e   :  { %3963 = vmatprep.mubr.bf16.mxu0 %v4746_v17 }
 0x184   :  { %3932 = vmatmul.mubr.bf16.gmra.mxu1 %v4748_v18 }
 0x185   :  { %3964 = vmatmul.mubr.bf16.gmra.mxu0 %v4748_v18  ;;  %3935 = vmatprep.mubr.bf16.mxu1 %v4758_v34 }
 0x186   :  { %3967 = vmatprep.mubr.bf16.mxu0 %v4758_v34 }
 0x18c   :  { %3936 = vmatmul.mubr.bf16.gmra.mxu1 %v4760_v35 }
 0x18d   :  { %3968 = vmatmul.mubr.bf16.gmra.mxu0 %v4760_v35 }
 0x1f3   :  { %v3797_v45 = vpop.f32.mrf.mxu1  ;;  %v3829_v46 = vpop.f32.mrf.mxu0 }
 0x1f4   :  { %v4798_v57 = vmul.f32 0.088388346, %v3797_v45  ;;  %v4800_v60 = vmul.f32 0.088388346, %v3829_v46 }
 0x1f5   :  { %v502_v55 = vpop.f32.mrf.mxu1  ;;  %v647_v56 = vpop.f32.mrf.mxu0 }
 0x1f6   :  { %v710_v63 = vmul.f32 0.088388346, %v502_v55  ;;  %v726_v0 = vmul.f32 0.088388346, %v647_v56 }
 0x1f7   :  { %v3798_v58 = vpop.f32.mrf.mxu1  ;;  %v3830_v59 = vpop.f32.mrf.mxu0 }
 0x1f8   :  { %v4802_v61 = vmul.f32 0.088388346, %v3798_v58  ;;  %v4804_v62 = vmul.f32 0.088388346, %v3830_v59 }
 0x1f9   :  { %v505_v1 = vpop.f32.mrf.mxu1  ;;  %v650_v2 = vpop.f32.mrf.mxu0 }
 0x1fa   :  { %v711_v5 = vmul.f32 0.088388346, %v505_v1  ;;  %v727_v6 = vmul.f32 0.088388346, %v650_v2 }
 0x1fb   :  { %v3801_v7 = vpop.f32.mrf.mxu1  ;;  %v3833_v8 = vpop.f32.mrf.mxu0 }
 0x1fc   :  { %v1394_v9 = vpack.c.bf16 %v711_v5, %v710_v63  ;;  %v1398_v10 = vpack.c.bf16 %v727_v6, %v726_v0  ;;  %v4814_v13 = vmul.f32 0.088388346, %v3801_v7  ;;  %v4816_v16 = vmul.f32 0.088388346, %v3833_v8 }
 0x1fd   :  { %v4810_v11 = vpop.f32.mrf.mxu1  ;;  %v4812_v12 = vpop.f32.mrf.mxu0 }
 0x1fe   :  { %3979 = vmatprep.mubr.bf16.mxu1 %v1394_v9  ;;  %3995 = vmatprep.mubr.bf16.mxu0 %v1398_v10 }
 0x1ff   :  { %v3802_v14 = vpop.f32.mrf.mxu1  ;;  %v3834_v15 = vpop.f32.mrf.mxu0 }
 0x200   :  { %v4818_v17 = vmul.f32 0.088388346, %v3802_v14  ;;  %v4820_v18 = vmul.f32 0.088388346, %v3834_v15 }
 0x201   :  { %v4822_v19 = vpop.f32.mrf.mxu1  ;;  %v4824_v20 = vpop.f32.mrf.mxu0 }
 0x203   :  { %v3805_v23 = vpop.f32.mrf.mxu1  ;;  %v3837_v24 = vpop.f32.mrf.mxu0 }
 0x204   :  { %v4830_v27 = vmul.f32 0.088388346, %v3805_v23  ;;  %v4832_v30 = vmul.f32 0.088388346, %v3837_v24 }
 0x205   :  { %v534_v25 = vpop.f32.mrf.mxu1  ;;  %v679_v26 = vpop.f32.mrf.mxu0 }
 0x206   :  { %v4838_v34 = vmul.f32 0.088388346, %v534_v25  ;;  %v4840_v35 = vmul.f32 0.088388346, %v679_v26  ;;  %v4886_v25 = vld [vmem:[#allocation11 + $0x30] sm:$0xff] }
 0x207   :  { %v3806_v28 = vpop.f32.mrf.mxu1  ;;  %v3838_v29 = vpop.f32.mrf.mxu0 }
 0x208   :  { %v4834_v31 = vmul.f32 0.088388346, %v3806_v28  ;;  %v4836_v33 = vmul.f32 0.088388346, %v3838_v29  ;;  %v4888_v28 = vld [vmem:[#allocation11 + $0x38] sm:$0xff] }
 0x209   :  { %v537_v32 = vpop.f32.mrf.mxu1  ;;  %v682_v36 = vpop.f32.mrf.mxu0 }
 0x20a   :  { %v4846_v39 = vmul.f32 0.088388346, %v537_v32  ;;  %v4848_v40 = vmul.f32 0.088388346, %v682_v36  ;;  %v4890_v32 = vld [vmem:[#allocation11 + $0x20] sm:$0xff] }
 0x20b   :  { %v3809_v41 = vpop.f32.mrf.mxu1  ;;  %v3841_v42 = vpop.f32.mrf.mxu0 }
 0x20c   :  { %v4854_v49 = vmul.f32 0.088388346, %v3809_v41  ;;  %v4856_v52 = vmul.f32 0.088388346, %v3841_v42  ;;  %v4892_v41 = vld [vmem:[#allocation11 + $0x28] sm:$0xff] }
 0x20d   :  { %v550_v47 = vpop.f32.mrf.mxu1  ;;  %v695_v48 = vpop.f32.mrf.mxu0 }
 0x20e   :  { %5435 = vst [vmem:[#allocation20_spill] sm:$0xff] %v4856_v52  ;;  %v4862_v45 = vmul.f32 0.088388346, %v550_v47  ;;  %v4864_v46 = vmul.f32 0.088388346, %v695_v48 }
 0x20f   :  { %v3810_v50 = vpop.f32.mrf.mxu1  ;;  %v3842_v51 = vpop.f32.mrf.mxu0 }
 0x210   :  { %v4858_v53 = vmul.f32 0.088388346, %v3810_v50  ;;  %v4860_v54 = vmul.f32 0.088388346, %v3842_v51  ;;  %5437 = vst [vmem:[#allocation22_spill] sm:$0xff] %v4864_v46 }
 0x211   :  { %v553_v55 = vpop.f32.mrf.mxu1  ;;  %v698_v56 = vpop.f32.mrf.mxu0 }
 0x212   :  { %5436 = vst [vmem:[#allocation21_spill] sm:$0xff] %v4860_v54  ;;  %v4870_v63 = vmul.f32 0.088388346, %v553_v55  ;;  %v4872_v0 = vmul.f32 0.088388346, %v698_v56 }
 0x213   :  { %v3861_v1 = vpop.f32.mrf.mxu1 }
 0x214   :  { %v3893_v6 = vpop.f32.mrf.mxu0  ;;  %v1404_v52 = vadd.f32 %v3861_v1, %v1388_v44 }
 0x215   :  { %v4878_v7 = vpop.f32.mrf.mxu1 }
 0x216   :  { %v4880_v8 = vpop.f32.mrf.mxu0 }
 0x217   :  { %v3862_v9 = vpop.f32.mrf.mxu1 }
 0x218   :  { %v3894_v10 = vpop.f32.mrf.mxu0 }
 0x219   :  { %v4882_v14 = vpop.f32.mrf.mxu1 }
 0x21a   :  { %v4884_v15 = vpop.f32.mrf.mxu0 }
 0x21b   :  { %v3865_v23 = vpop.f32.mrf.mxu1 }
 0x21c   :  { %v3897_v24 = vpop.f32.mrf.mxu0  ;;  %v1408_v42 = vadd.f32 %v3865_v23, %v4886_v25 }
 0x21d   :  { %v872_v26 = vpop.f32.mrf.mxu1  ;;  %v1416_v50 = vadd.f32 %v3897_v24, %v4886_v25  ;;  %v1386_v24 = vld [vmem:[#allocation11] sm:$0xff] }
 0x21e   :  { %v1017_v29 = vpop.f32.mrf.mxu0  ;;  %v1406_v56 = vadd.f32 %v4890_v32, %v872_v26 }
 0x21f   :  { %v3866_v36 = vpop.f32.mrf.mxu1  ;;  %v1414_v58 = vadd.f32 %v4890_v32, %v1017_v29 }
 0x220   :  { %v1409_v47 = vadd.f32 %v3866_v36, %v4888_v28  ;;  %v3898_v48 = vpop.f32.mrf.mxu0 }
 0x221   :  { %v1417_v51 = vadd.f32 %v3898_v48, %v4888_v28  ;;  %v875_v55 = vpop.f32.mrf.mxu1  ;;  %v1389_v48 = vld [vmem:[#allocation11 + $0x18] sm:$0xff] }
 0x222   :  { %v1421_v59 = vpack.c.bf16 %v1409_v47, %v1408_v42  ;;  %v1407_v5 = vadd.f32 %v4892_v41, %v875_v55  ;;  %v1020_v38 = vpop.f32.mrf.mxu0  ;;  %v1387_v55 = vld [vmem:[#allocation11 + $0x8] sm:$0xff] }
 0x223   :  { %v1425_v2 = vpack.c.bf16 %v1417_v51, %v1416_v50  ;;  %v1415_v23 = vadd.f32 %v4892_v41, %v1020_v38  ;;  %v3869_v37 = vpop.f32.mrf.mxu1  ;;  %v1405_v38 = vadd.f32 %v3862_v9, %v1389_v48 }
 0x224   :  { %v1420_v36 = vpack.c.bf16 %v1407_v5, %v1406_v56  ;;  %v1973_v43 = vadd.f32 %v3869_v37, %v1388_v44  ;;  %v3901_v22 = vpop.f32.mrf.mxu0  ;;  %3971 = vmatprep.subr.bf16.mxu1 %v1421_v59  ;;  %v1413_v37 = vadd.f32 %v3894_v10, %v1389_v48 }
 0x225   :  { %v1424_v21 = vpack.c.bf16 %v1415_v23, %v1414_v58  ;;  %v1981_v4 = vadd.f32 %v3901_v22, %v1388_v44  ;;  %3987 = vmatprep.subr.bf16.mxu0 %v1425_v2  ;;  %v888_v26 = vpop.f32.mrf.mxu1  ;;  %3972 = vmatpush3.bf16.xpose.msra.mxu1 %v1421_v59  ;;  %v1412_v59 = vadd.f32 %v3893_v6, %v1388_v44 }
 0x226   :  { %v1971_v42 = vadd.f32 %v1386_v24, %v888_v26  ;;  %v1033_v47 = vpop.f32.mrf.mxu0  ;;  %3988 = vmatpush3.bf16.xpose.msra.mxu0 %v1425_v2  ;;  %3973 = vmatprep.subr.bf16.mxu1 %v1420_v36 }
 0x227   :  { %v1979_v29 = vadd.f32 %v1386_v24, %v1033_v47  ;;  %3989 = vmatprep.subr.bf16.mxu0 %v1424_v21  ;;  %v3870_v50 = vpop.f32.mrf.mxu1  ;;  %v1419_v47 = vpack.c.bf16 %v1405_v38, %v1404_v52  ;;  %v1403_v52 = vadd.f32 %v1387_v55, %v4882_v14 }
 0x228   :  { %v1974_v51 = vadd.f32 %v3870_v50, %v1389_v48  ;;  %v3902_v5 = vpop.f32.mrf.mxu0  ;;  %v1423_v50 = vpack.c.bf16 %v1413_v37, %v1412_v59 }
 0x229   :  { %v1982_v56 = vadd.f32 %v3902_v5, %v1389_v48  ;;  %v891_v3 = vpop.f32.mrf.mxu1 }
 0x22a   :  { %v4902_v58 = vpack.c.bf16 %v1974_v51, %v1973_v43  ;;  %v1972_v22 = vadd.f32 %v1387_v55, %v891_v3  ;;  %v1036_v23 = vpop.f32.mrf.mxu0 }
 0x22b   :  { %v4904_v26 = vpack.c.bf16 %v1982_v56, %v1981_v4  ;;  %v1980_v2 = vadd.f32 %v1387_v55, %v1036_v23  ;;  %v4906_v54 = vpop.f32.mrf.mxu1 }
 0x22c   :  { %v4908_v46 = vpack.c.bf16 %v1972_v22, %v1971_v42  ;;  %v3905_v9 = vpop.f32.mrf.mxu0  ;;  %v1411_v42 = vadd.f32 %v1387_v55, %v4884_v15 }
 0x22d   :  { %v4910_v10 = vpack.c.bf16 %v1980_v2, %v1979_v29  ;;  %v1985_v48 = vadd.f32 %v3905_v9, %v4886_v25  ;;  %v904_v1 = vpop.f32.mrf.mxu1  ;;  %3974 = vmatpush3.bf16.xpose.msra.mxu1 %v1420_v36  ;;  %v1402_v36 = vadd.f32 %v1386_v24, %v4878_v7 }
 0x22e   :  { %v1975_v3 = vadd.f32 %v4890_v32, %v904_v1  ;;  %v1049_v43 = vpop.f32.mrf.mxu0  ;;  %3990 = vmatpush3.bf16.xpose.msra.mxu0 %v1424_v21  ;;  %3975 = vmatprep.subr.bf16.mxu1 %v1419_v47  ;;  %v1410_v21 = vadd.f32 %v1386_v24, %v4880_v8 }
 0x22f   :  { %v1983_v4 = vadd.f32 %v4890_v32, %v1049_v43  ;;  %3991 = vmatprep.subr.bf16.mxu0 %v1423_v50  ;;  %v4915_v44 = vpop.f32.mrf.mxu1  ;;  %v1418_v56 = vpack.c.bf16 %v1403_v52, %v1402_v36 }
 0x230   :  { %v3906_v6 = vpop.f32.mrf.mxu0  ;;  %v1422_v23 = vpack.c.bf16 %v1411_v42, %v1410_v21  ;;  %v730_v42 = vmul.f32 0.088388346, %v4812_v12 }
 0x231   :  { %v1986_v29 = vadd.f32 %v3906_v6, %v4888_v28  ;;  %v907_v38 = vpop.f32.mrf.mxu1 }
 0x232   :  { %v1976_v51 = vadd.f32 %v4892_v41, %v907_v38  ;;  %v1052_v5 = vpop.f32.mrf.mxu0 }
 0x233   :  { %v4923_v37 = vpack.c.bf16 %v1986_v29, %v1985_v48  ;;  %v1984_v32 = vadd.f32 %v4892_v41, %v1052_v5 }
 0x234   :  { %v4926_v22 = vpack.c.bf16 %v1976_v51, %v1975_v3  ;;  %v3925_v14 = vpop.f32.mrf.mxu1  ;;  %v715_v3 = vmul.f32 0.088388346, %v4822_v19  ;;  %v5438_v19 = vpack.c.bf16 %v4802_v61, %v4798_v57 }
 0x235   :  { %v4928_v15 = vpack.c.bf16 %v1984_v32, %v1983_v4  ;;  %v3957_v55 = vpop.f32.mrf.mxu0  ;;  %3976 = vmatpush3.bf16.xpose.msra.mxu1 %v1419_v47  ;;  %v731_v4 = vmul.f32 0.088388346, %v4824_v20 }
 0x236   :  { %v1178_v59 = vpop.f32.mrf.mxu1  ;;  %3992 = vmatpush3.bf16.xpose.msra.mxu0 %v1423_v50  ;;  %3977 = vmatprep.subr.bf16.mxu1 %v1418_v56  ;;  %v714_v50 = vmul.f32 0.088388346, %v4810_v11  ;;  %v5439_v11 = vpack.c.bf16 %v4804_v62, %v4800_v60 }
 0x237   :  { %v1323_v7 = vpop.f32.mrf.mxu0  ;;  %3993 = vmatprep.subr.bf16.mxu0 %v1422_v23  ;;  %v1400_v5 = vpack.c.bf16 %v731_v4, %v730_v42 }
 0x238   :  { %v3926_v2 = vpop.f32.mrf.mxu1  ;;  %v1396_v36 = vpack.c.bf16 %v715_v3, %v714_v50 }
 0x239   :  { %v3958_v8 = vpop.f32.mrf.mxu0 }
 0x23a   :  { %v1181_v24 = vpop.f32.mrf.mxu1  ;;  %v1431_v61 = vpack.c.bf16 %v3958_v8, %v3957_v55  ;;  %v5442_v55 = vpack.c.bf16 %v4820_v18, %v4816_v16  ;;  %v1978_v8 = vadd.f32 %v4915_v44, %v4888_v28 }
 0x23b   :  { %v1326_v9 = vpop.f32.mrf.mxu0 }
 0x23c   :  { %v3929_v48 = vpop.f32.mrf.mxu1 }
 0x23d   :  { %v3961_v41 = vpop.f32.mrf.mxu0  ;;  %3978 = vmatpush3.bf16.xpose.msra.mxu1 %v1418_v56 }
 0x23e   :  { %v1194_v1 = vpop.f32.mrf.mxu1  ;;  %3994 = vmatpush3.bf16.xpose.msra.mxu0 %v1422_v23 }
 0x23f   :  { %v1339_v43 = vpop.f32.mrf.mxu0 }
 0x240   :  { %v3930_v47 = vpop.f32.mrf.mxu1 }
 0x241   :  { %v1429_v52 = vpack.c.bf16 %v3930_v47, %v3929_v48  ;;  %v3962_v6 = vpop.f32.mrf.mxu0 }
 0x242   :  { %v1433_v29 = vpack.c.bf16 %v3962_v6, %v3961_v41  ;;  %v1197_v38 = vpop.f32.mrf.mxu1  ;;  %v1427_v41 = vpack.c.bf16 %v3926_v2, %v3925_v14  ;;  %v5441_v14 = vpack.c.bf16 %v4818_v17, %v4814_v13  ;;  %v1426_v2 = vpack.c.bf16 %v1181_v24, %v1178_v59 }
 0x243   :  { %v1342_v51 = vpop.f32.mrf.mxu0  ;;  %4003 = vmatprep.subr.bf16.mxu1 %v1429_v52  ;;  %v1428_v20 = vpack.c.bf16 %v1197_v38, %v1194_v1  ;;  %v1977_v13 = vadd.f32 %v4906_v54, %v4886_v25 }
 0x244   :  { %4019 = vmatprep.subr.bf16.mxu0 %v1433_v29  ;;  %v3933_v21 = vpop.f32.mrf.mxu1  ;;  %3980 = vmatmul.mubr.bf16.vlgmr.msra.gmra.mxu1 %v5438_v19  ;;  %v1432_v12 = vpack.c.bf16 %v1342_v51, %v1339_v43 }
 0x245   :  { %v3965_v32 = vpop.f32.mrf.mxu0  ;;  %3996 = vmatmul.mubr.bf16.vlgmr.msra.gmra.mxu0 %v5439_v11  ;;  %3983 = vmatprep.mubr.bf16.mxu1 %v1396_v36  ;;  %v4964_v18 = vpack.c.bf16 %v1978_v8, %v1977_v13 }
 0x246   :  { %v1210_v56 = vpop.f32.mrf.mxu1  ;;  %3999 = vmatprep.mubr.bf16.mxu0 %v1400_v5  ;;  %4004 = vmatpush3.bf16.msra.mxu1 %v1429_v52  ;;  %v1430_v52 = vpack.c.bf16 %v1326_v9, %v1323_v7 }
 0x247   :  { %v1355_v23 = vpop.f32.mrf.mxu0  ;;  %4020 = vmatpush3.bf16.msra.mxu0 %v1433_v29  ;;  %4005 = vmatprep.subr.bf16.mxu1 %v1428_v20 }
 0x248   :  { %4021 = vmatprep.subr.bf16.mxu0 %v1432_v12  ;;  %v3934_v48 = vpop.f32.mrf.mxu1 }
 0x249   :  { %v4940_v3 = vpack.c.bf16 %v3934_v48, %v3933_v21  ;;  %v3966_v57 = vpop.f32.mrf.mxu0 }
 0x24a   :  { %v4942_v1 = vpack.c.bf16 %v3966_v57, %v3965_v32  ;;  %v1213_v4 = vpop.f32.mrf.mxu1  ;;  %4006 = vmatpush3.bf16.msra.mxu1 %v1428_v20 }
 0x24b   :  { %v4944_v60 = vpack.c.bf16 %v1213_v4, %v1210_v56  ;;  %v1358_v62 = vpop.f32.mrf.mxu0  ;;  %4022 = vmatpush3.bf16.msra.mxu0 %v1432_v12  ;;  %4007 = vmatprep.subr.bf16.mxu1 %v1427_v41 }
 0x24c   :  { %v4946_v43 = vpack.c.bf16 %v1358_v62, %v1355_v23  ;;  %4023 = vmatprep.subr.bf16.mxu0 %v1431_v61  ;;  %v3937_v47 = vpop.f32.mrf.mxu1  ;;  %3984 = vmatmul.mubr.bf16.gmra.mxu1 %v5441_v14 }
 0x24d   :  { %v3969_v50 = vpop.f32.mrf.mxu0  ;;  %4000 = vmatmul.mubr.bf16.gmra.mxu0 %v5442_v55 }
 0x24e   :  { %5440 = vst [vmem:[#allocation23_spill] sm:$0xff] %v4946_v43  ;;  %v4956_v6 = vpop.f32.mrf.mxu1  ;;  %4008 = vmatpush3.bf16.msra.mxu1 %v1427_v41 }
 0x24f   :  { %v4958_v42 = vpop.f32.mrf.mxu0  ;;  %4024 = vmatpush3.bf16.msra.mxu0 %v1431_v61  ;;  %4009 = vmatprep.subr.bf16.mxu1 %v1426_v2 }
 0x250   :  { %4025 = vmatprep.subr.bf16.mxu0 %v1430_v52  ;;  %v3938_v17 = vpop.f32.mrf.mxu1 }
 0x251   :  { %v4962_v59 = vpack.c.bf16 %v3938_v17, %v3937_v47  ;;  %v3970_v16 = vpop.f32.mrf.mxu0 }
 0x252   :  { %v4966_v24 = vpack.c.bf16 %v3970_v16, %v3969_v50  ;;  %4010 = vmatpush3.bf16.msra.mxu1 %v1426_v2  ;;  %v4969_v28 = vpop.f32.mrf.mxu1 }
 0x253   :  { %4026 = vmatpush3.bf16.msra.mxu0 %v1430_v52  ;;  %v4971_v44 = vpop.f32.mrf.mxu0 }
 0x254   :  { %4035 = vmatprep.subr.bf16.mxu0 %v4964_v18 }
 0x304   :  { %v3981_v7 = vpop.f32.mrf.mxu1 }
 0x305   :  { %v3997_v9 = vpop.f32.mrf.mxu0  ;;  %v1570_v5 = vsel %vm242_vm0, %v3981_v7, -inf }
 0x306   :  { %v1594_v54 = vsel %vm242_vm0, %v3997_v9, -inf  ;;  %v4974_v25 = vpop.f32.mrf.mxu1 }
 0x307   :  { %1595 = vmax.xlane.f32.xlu0 %v1594_v54  ;;  %v1533_v29 = vpop.f32.mrf.mxu0  ;;  %v1564_v38 = vsel %vm242_vm0, %v4974_v25, -inf }
 0x308   :  { %1565 = vmax.xlane.f32.xlu1 %v1564_v38  ;;  %v3982_v36 = vpop.f32.mrf.mxu1  ;;  %v1588_v11 = vsel %vm242_vm0, %v1533_v29, -inf }
 0x309   :  { %v3998_v51 = vpop.f32.mrf.mxu0  ;;  %v1573_v12 = vsel %vm242_vm0, %v3982_v36, -inf }
 0x30a   :  { %v1597_v19 = vsel %vm242_vm0, %v3998_v51, -inf  ;;  %v4982_v20 = vpop.f32.mrf.mxu1 }
 0x30b   :  { %v4979_v21 = vpop.f32.mrf.mxu0  ;;  %1571 = vmax.xlane.f32.xlu0 %v1570_v5  ;;  %v1567_v41 = vsel %vm242_vm0, %v4982_v20, -inf }
 0x30c   :  { %1598 = vmax.xlane.f32.xlu1 %v1597_v19  ;;  %v4988_v56 = vpop.f32.mrf.mxu1  ;;  %v1591_v48 = vsel %vm242_vm0, %v4979_v21, -inf }
 0x30d   :  { %v4984_v32 = vpop.f32.mrf.mxu0  ;;  %v1582_v13 = vsel %vm242_vm0, %v4988_v56, -inf }
 0x30e   :  { %v4996_v57 = vpop.f32.mrf.mxu1  ;;  %v1606_v4 = vsel %vm242_vm0, %v4984_v32, -inf }
 0x30f   :  { %1589 = vmax.xlane.f32.xlu0 %v1588_v11  ;;  %v4990_v23 = vpop.f32.mrf.mxu0  ;;  %v1576_v8 = vsel %vm242_vm0, %v4996_v57, -inf }
 0x310   :  { %1574 = vmax.xlane.f32.xlu1 %v1573_v12  ;;  %v5001_v47 = vpop.f32.mrf.mxu1  ;;  %v1600_v2 = vsel %vm242_vm0, %v4990_v23, -inf }
 0x311   :  { %v4002_v61 = vpop.f32.mrf.mxu0  ;;  %v1585_v17 = vsel %vm242_vm0, %v5001_v47, -inf }
 0x312   :  { %v1609_v62 = vsel %vm242_vm0, %v4002_v61, -inf  ;;  %v5009_v55 = vpop.f32.mrf.mxu1 }
 0x313   :  { %1592 = vmax.xlane.f32.xlu0 %v1591_v48  ;;  %v5003_v14 = vpop.f32.mrf.mxu0  ;;  %v1579_v52 = vsel %vm242_vm0, %v5009_v55, -inf }
 0x314   :  { %1568 = vmax.xlane.f32.xlu1 %v1567_v41  ;;  %v1603_v50 = vsel %vm242_vm0, %v5003_v14, -inf }
 0x317   :  { %1607 = vmax.xlane.f32.xlu0 %v1606_v4 }
 0x318   :  { %1610 = vmax.xlane.f32.xlu1 %v1609_v62 }
 0x31b   :  { %1601 = vmax.xlane.f32.xlu0 %v1600_v2 }
 0x31c   :  { %1604 = vmax.xlane.f32.xlu1 %v1603_v50 }
 0x31f   :  { %1577 = vmax.xlane.f32.xlu0 %v1576_v8 }
 0x320   :  { %1580 = vmax.xlane.f32.xlu1 %v1579_v52 }
 0x323   :  { %1583 = vmax.xlane.f32.xlu0 %v1582_v13 }
 0x324   :  { %1586 = vmax.xlane.f32.xlu1 %v1585_v17 }
 0x390   :  { %v1596_v16 = vpop.xlane.xlu0 %1595 }
 0x391   :  { %v1622_v54 = vsub.f32 %v3997_v9, %v1596_v16  ;;  %v1566_v38 = vpop.xlane.xlu1 %1565 }
 0x392   :  { %v1612_v41 = vsub.f32 %v4974_v25, %v1566_v38 }
 0x393   :  { %v1648_v5 = vmul.f32 1.442695, %v1622_v54 }
 0x394   :  { %v1572_v19 = vpop.xlane.xlu0 %1571  ;;  %v1628_v13 = vmul.f32 1.442695, %v1612_v41 }
 0x395   :  { %4251 = vpow2.f32 %v1648_v5  ;;  %v1614_v11 = vsub.f32 %v3981_v7, %v1572_v19  ;;  %v1599_v12 = vpop.xlane.xlu1 %1598 }
 0x396   :  { %v1623_v48 = vsub.f32 %v3998_v51, %v1599_v12 }
 0x397   :  { %v1632_v4 = vmul.f32 1.442695, %v1614_v11 }
 0x398   :  { %v1650_v62 = vmul.f32 1.442695, %v1623_v48  ;;  %v1590_v2 = vpop.xlane.xlu0 %1589 }
 0x399   :  { %4253 = vpow2.f32 %v1632_v4  ;;  %v1620_v50 = vsub.f32 %v1533_v29, %v1590_v2  ;;  %v1575_v8 = vpop.xlane.xlu1 %1574 }
 0x39a   :  { %4255 = vpow2.f32 %v1650_v62  ;;  %v1615_v52 = vsub.f32 %v3982_v36, %v1575_v8 }
 0x39b   :  { %v1644_v17 = vmul.f32 1.442695, %v1620_v50 }
 0x39c   :  { %v1634_v9 = vmul.f32 1.442695, %v1615_v52  ;;  %v1593_v16 = vpop.xlane.xlu0 %1592 }
 0x39d   :  { %4257 = vpow2.f32 %v1644_v17  ;;  %v1621_v54 = vsub.f32 %v4979_v21, %v1593_v16  ;;  %v1569_v7 = vpop.xlane.xlu1 %1568 }
 0x39e   :  { %4259 = vpow2.f32 %v1634_v9  ;;  %v1613_v51 = vsub.f32 %v4982_v20, %v1569_v7 }
 0x39f   :  { %4261 = vpow2.f32 %v1628_v13  ;;  %v1646_v25 = vmul.f32 1.442695, %v1621_v54 }
 0x3a0   :  { %v1630_v38 = vmul.f32 1.442695, %v1613_v51  ;;  %v1608_v5 = vpop.xlane.xlu0 %1607 }
 0x3a1   :  { %4263 = vpow2.f32 %v1646_v25  ;;  %v1626_v29 = vsub.f32 %v4984_v32, %v1608_v5  ;;  %v1611_v19 = vpop.xlane.xlu1 %1610 }
 0x3a2   :  { %v5023_v36 = vpop.eup %4251  ;;  %v1627_v11 = vsub.f32 %v4002_v61, %v1611_v19  ;;  %4265 = vpow2.f32 %v1630_v38 }
 0x3a3   :  { %v1656_v12 = vmul.f32 1.442695, %v1626_v29  ;;  %v1690_v48 = vsel %vm242_vm0, %v5023_v36, 0.0 }
 0x3a4   :  { %v1658_v21 = vmul.f32 1.442695, %v1627_v11  ;;  %v1602_v41 = vpop.xlane.xlu0 %1601  ;;  %1691 = vadd.xlane.f32.xlu0 %v1690_v48 }
 0x3a5   :  { %4267 = vpow2.f32 %v1656_v12  ;;  %v1624_v20 = vsub.f32 %v4990_v23, %v1602_v41  ;;  %v1605_v4 = vpop.xlane.xlu1 %1604 }
 0x3a6   :  { %v5028_v62 = vpop.eup %4253  ;;  %v1625_v32 = vsub.f32 %v5003_v14, %v1605_v4  ;;  %4269 = vpow2.f32 %v1658_v21 }
 0x3a7   :  { %v5031_v2 = vpop.eup %4255  ;;  %v1652_v50 = vmul.f32 1.442695, %v1624_v20  ;;  %v1666_v61 = vsel %vm242_vm0, %v5028_v62, 0.0 }
 0x3a8   :  { %v1654_v8 = vmul.f32 1.442695, %v1625_v32  ;;  %1667 = vadd.xlane.f32.xlu0 %v1666_v61  ;;  %v1578_v52 = vpop.xlane.xlu0 %1577  ;;  %v1693_v13 = vsel %vm242_vm0, %v5031_v2, 0.0 }
 0x3a9   :  { %4271 = vpow2.f32 %v1652_v50  ;;  %v1616_v23 = vsub.f32 %v4996_v57, %v1578_v52  ;;  %1694 = vadd.xlane.f32.xlu1 %v1693_v13  ;;  %v1581_v17 = vpop.xlane.xlu1 %1580 }
 0x3aa   :  { %v5038_v9 = vpop.eup %4257  ;;  %v1617_v14 = vsub.f32 %v5009_v55, %v1581_v17  ;;  %4273 = vpow2.f32 %v1654_v8 }
 0x3ab   :  { %v5041_v16 = vpop.eup %4259  ;;  %v1636_v54 = vmul.f32 1.442695, %v1616_v23  ;;  %v1684_v7 = vsel %vm242_vm0, %v5038_v9, 0.0 }
 0x3ac   :  { %v5045_v51 = vpop.eup %4261  ;;  %v1638_v25 = vmul.f32 1.442695, %v1617_v14  ;;  %1685 = vadd.xlane.f32.xlu0 %v1684_v7  ;;  %v1584_v38 = vpop.xlane.xlu0 %1583  ;;  %v1669_v57 = vsel %vm242_vm0, %v5041_v16, 0.0 }
 0x3ad   :  { %4275 = vpow2.f32 %v1636_v54  ;;  %v1618_v5 = vsub.f32 %v4988_v56, %v1584_v38  ;;  %1670 = vadd.xlane.f32.xlu1 %v1669_v57  ;;  %v1587_v55 = vpop.xlane.xlu1 %1586  ;;  %v1660_v12 = vsel %vm242_vm0, %v5045_v51, 0.0 }
 0x3ae   :  { %v5050_v29 = vpop.eup %4263  ;;  %v1619_v19 = vsub.f32 %v5001_v47, %v1587_v55  ;;  %4277 = vpow2.f32 %v1638_v25 }
 0x3af   :  { %v1640_v11 = vmul.f32 1.442695, %v1618_v5  ;;  %v1687_v21 = vsel %vm242_vm0, %v5050_v29, 0.0  ;;  %v5057_v41 = vpop.eup %4265 }
 0x3b0   :  { %v1642_v48 = vmul.f32 1.442695, %v1619_v19  ;;  %1661 = vadd.xlane.f32.xlu0 %v1660_v12  ;;  %v1663_v47 = vsel %vm242_vm0, %v5057_v41, 0.0 }
 0x3b1   :  { %4279 = vpow2.f32 %v1640_v11  ;;  %1688 = vadd.xlane.f32.xlu1 %v1687_v21 }
 0x3b2   :  { %v5059_v56 = vpop.eup %4267  ;;  %4281 = vpow2.f32 %v1642_v48 }
 0x3b3   :  { %v1702_v20 = vsel %vm242_vm0, %v5059_v56, 0.0  ;;  %v5065_v4 = vpop.eup %4269 }
 0x3b4   :  { %1703 = vadd.xlane.f32.xlu0 %v1702_v20  ;;  %v1705_v61 = vsel %vm242_vm0, %v5065_v4, 0.0 }
 0x3b5   :  { %1664 = vadd.xlane.f32.xlu1 %v1663_v47 }
 0x3b6   :  { %v5067_v32 = vpop.eup %4271 }
 0x3b7   :  { %v1696_v50 = vsel %vm242_vm0, %v5067_v32, 0.0  ;;  %v5073_v8 = vpop.eup %4273 }
 0x3b8   :  { %1697 = vadd.xlane.f32.xlu0 %v1696_v50  ;;  %v1699_v23 = vsel %vm242_vm0, %v5073_v8, 0.0 }
 0x3b9   :  { %1706 = vadd.xlane.f32.xlu1 %v1705_v61 }
 0x3ba   :  { %v5075_v52 = vpop.eup %4275 }
 0x3bb   :  { %v1672_v13 = vsel %vm242_vm0, %v5075_v52, 0.0  ;;  %v5081_v17 = vpop.eup %4277 }
 0x3bc   :  { %1673 = vadd.xlane.f32.xlu0 %v1672_v13  ;;  %v1675_v7 = vsel %vm242_vm0, %v5081_v17, 0.0 }
 0x3bd   :  { %1700 = vadd.xlane.f32.xlu1 %v1699_v23 }
 0x3be   :  { %v5083_v14 = vpop.eup %4279 }
 0x3bf   :  { %v1678_v54 = vsel %vm242_vm0, %v5083_v14, 0.0  ;;  %v5089_v25 = vpop.eup %4281 }
 0x3c0   :  { %1679 = vadd.xlane.f32.xlu0 %v1678_v54  ;;  %v1681_v38 = vsel %vm242_vm0, %v5089_v25, 0.0 }
 0x3c1   :  { %1676 = vadd.xlane.f32.xlu1 %v1675_v7 }
 0x3c5   :  { %1682 = vadd.xlane.f32.xlu1 %v1681_v38 }
 0x42d   :  { %v1692_v57 = vpop.xlane.xlu0 %1691 }
 0x431   :  { %v1668_v5 = vpop.xlane.xlu0 %1667 }
 0x432   :  { %v1695_v55 = vpop.xlane.xlu1 %1694 }
 0x433   :  { %4283 = vrcp.f32 %v1695_v55 }
 0x435   :  { %v1686_v19 = vpop.xlane.xlu0 %1685 }
 0x436   :  { %v1671_v11 = vpop.xlane.xlu1 %1670  ;;  %4285 = vrcp.f32 %v1686_v19 }
 0x437   :  { %4287 = vrcp.f32 %v1692_v57 }
 0x439   :  { %v1662_v12 = vpop.xlane.xlu0 %1661 }
 0x43a   :  { %v1689_v48 = vpop.xlane.xlu1 %1688 }
 0x43b   :  { %4289 = vrcp.f32 %v1689_v48 }
 0x43c   :  { %4291 = vrcp.f32 %v1671_v11 }
 0x43d   :  { %4293 = vrcp.f32 %v1662_v12  ;;  %v1704_v21 = vpop.xlane.xlu0 %1703 }
 0x43e   :  { %4295 = vrcp.f32 %v1668_v5  ;;  %v1665_v20 = vpop.xlane.xlu1 %1664 }
 0x43f   :  { %4297 = vrcp.f32 %v1665_v20 }
 0x440   :  { %v4284_v61 = vpop.eup %4283 }
 0x441   :  { %v1698_v47 = vpop.xlane.xlu0 %1697  ;;  %v1735_v57 = vmul.f32 %v4284_v61, %v5031_v2 }
 0x442   :  { %v1707_v50 = vpop.xlane.xlu1 %1706 }
 0x443   :  { %4299 = vrcp.f32 %v1707_v50  ;;  %v4286_v23 = vpop.eup %4285 }
 0x444   :  { %4301 = vrcp.f32 %v1698_v47  ;;  %v4288_v7 = vpop.eup %4287  ;;  %v1732_v5 = vmul.f32 %v4286_v23, %v5038_v9 }
 0x445   :  { %v1674_v13 = vpop.xlane.xlu0 %1673  ;;  %4303 = vrcp.f32 %v1704_v21  ;;  %v1734_v12 = vmul.f32 %v4288_v7, %v5023_v36 }
 0x446   :  { %v1701_v54 = vpop.xlane.xlu1 %1700 }
 0x447   :  { %4305 = vrcp.f32 %v1701_v54  ;;  %v1745_v43 = vpack.c.bf16 %v1735_v57, %v1734_v12 }
 0x448   :  { %v4290_v38 = vpop.eup %4289  ;;  %4307 = vrcp.f32 %v1674_v13 }
 0x449   :  { %v4292_v55 = vpop.eup %4291  ;;  %v1733_v19 = vmul.f32 %v4290_v38, %v5050_v29  ;;  %v1680_v48 = vpop.xlane.xlu0 %1679 }
 0x44a   :  { %v4294_v11 = vpop.eup %4293  ;;  %v1677_v20 = vpop.xlane.xlu1 %1676  ;;  %v1727_v54 = vmul.f32 %v4292_v55, %v5041_v16 }
 0x44b   :  { %v4296_v47 = vpop.eup %4295  ;;  %4309 = vrcp.f32 %v1677_v20  ;;  %v1744_v21 = vpack.c.bf16 %v1733_v19, %v1732_v5  ;;  %v1724_v2 = vmul.f32 %v4294_v11, %v5045_v51 }
 0x44c   :  { %v4298_v50 = vpop.eup %4297  ;;  %4311 = vrcp.f32 %v1680_v48  ;;  %v1726_v29 = vmul.f32 %v4296_v47, %v5028_v62 }
 0x44d   :  { %4027 = vmatprep.mubr.msk.bf16.mxu0 %vm242_vm0, %v1744_v21  ;;  %v1725_v9 = vmul.f32 %v4298_v50, %v5057_v41 }
 0x44e   :  { %4028 = vmatmul.mubr.msk.bf16.vlgmr.msra.gmra.mxu0 %vm242_vm0, %v1745_v43  ;;  %v1683_v36 = vpop.xlane.xlu1 %1682  ;;  %v1741_v13 = vpack.c.bf16 %v1727_v54, %v1726_v29 }
 0x44f   :  { %4036 = vmatpush3.bf16.xpose.msra.mxu0 %v4964_v18  ;;  %4313 = vrcp.f32 %v1683_v36  ;;  %v1740_v61 = vpack.c.bf16 %v1725_v9, %v1724_v2 }
 0x450   :  { %4037 = vmatprep.subr.bf16.mxu0 %v4926_v22  ;;  %v4300_v16 = vpop.eup %4299 }
 0x451   :  { %4011 = vmatprep.mubr.msk.bf16.mxu1 %vm242_vm0, %v1740_v61  ;;  %v4302_v23 = vpop.eup %4301  ;;  %v1739_v62 = vmul.f32 %v4300_v16, %v5065_v4 }
 0x452   :  { %4012 = vmatmul.mubr.msk.bf16.vlgmr.msra.gmra.mxu1 %vm242_vm0, %v1741_v13  ;;  %v4304_v51 = vpop.eup %4303  ;;  %v1736_v43 = vmul.f32 %v4302_v23, %v5067_v32  ;;  %v5443_v32 = vpack.c.bf16 %v4846_v39, %v4838_v34  ;;  %v1997_v34 = vpack.c.bf16 %v4969_v28, %v4956_v6  ;;  %v5444_v39 = vpack.c.bf16 %v4834_v31, %v4830_v27 }
 0x453   :  { %v1738_v38 = vmul.f32 %v4304_v51, %v5059_v56  ;;  %v4560_v27 = vmov 0  }
 0x454   :  { %v4306_v41 = vpop.eup %4305 }
 0x455   :  { %v1737_v7 = vmul.f32 %v4306_v41, %v5073_v8  ;;  %v4308_v18 = vpop.eup %4307  ;;  %v1747_v5 = vpack.c.bf16 %v1739_v62, %v1738_v38 }
 0x456   :  { %v1728_v19 = vmul.f32 %v4308_v18, %v5075_v52 }
 0x457   :  { %4038 = vmatpush3.bf16.xpose.msra.mxu0 %v4926_v22  ;;  %v1746_v57 = vpack.c.bf16 %v1737_v7, %v1736_v43  ;;  %v5162_v7 = vld [vmem:[%s5419_s4] sm:$0xff]  }
 0x458   :  { %v4310_v55 = vpop.eup %4309  ;;  %4039 = vmatprep.subr.bf16.mxu0 %v4902_v58 }
 0x459   :  { %4031 = vmatprep.mubr.msk.bf16.mxu0 %vm242_vm0, %v1746_v57  ;;  %v1729_v4 = vmul.f32 %v4310_v55, %v5081_v17  ;;  %v4312_v11 = vpop.eup %4311  ;;  %v5445_v17 = vpack.c.bf16 %v4870_v63, %v4862_v45  ;;  %v5447_v55 = vpack.c.bf16 %v4848_v40, %v4840_v35  ;;  %v2001_v35 = vpack.c.bf16 %v4971_v44, %v4958_v42  ;;  %v5454_v42 = vld [vmem:[#allocation23_spill] sm:$0xff] }
 0x45a   :  { %4032 = vmatmul.mubr.msk.bf16.gmra.mxu0 %vm242_vm0, %v1747_v5  ;;  %v1730_v8 = vmul.f32 %v4312_v11, %v5083_v14  ;;  %v5448_v40 = vpack.c.bf16 %v4836_v33, %v4832_v30  ;;  %v2524_v30 = vlaneseq }
 0x45b   :  { %4043 = vmatprep.mubr.bf16.mxu0 %v5443_v32  ;;  %v1742_v56 = vpack.c.bf16 %v1729_v4, %v1728_v19 }
 0x45c   :  { %v4314_v22 = vpop.eup %4313  ;;  %v2525_v33 = vshrl.u32 %v2524_v30, 7 }
 0x45d   :  { %4015 = vmatprep.mubr.msk.bf16.mxu1 %vm242_vm0, %v1742_v56  ;;  %v1731_v12 = vmul.f32 %v4314_v22, %v5089_v25  ;;  %v2542_v22 = vld [vmem:[%s5427_s12] sm:$0x3] }
 0x45e   :  { %v2530_v44 = vsub.s32 1, %v2525_v33 }
 0x45f   :  { %4040 = vmatpush3.bf16.xpose.msra.mxu0 %v4902_v58  ;;  %v1743_v52 = vpack.c.bf16 %v1731_v12, %v1730_v8 }
 0x460   :  { %4041 = vmatprep.subr.bf16.mxu0 %v4908_v46 }
 0x461   :  { %4016 = vmatmul.mubr.msk.bf16.gmra.mxu1 %vm242_vm0, %v1743_v52 }
 0x462   :  { %1952 = vmatprep.mubr.bf16.mxu1 %v4560_v27 }
 0x467   :  { %4042 = vmatpush3.bf16.xpose.msra.mxu0 %v4908_v46  ;;  %v5446_v46 = vpack.c.bf16 %v4858_v53, %v4854_v49 }
 0x468   :  { %4067 = vmatprep.subr.bf16.mxu0 %v4962_v59 }
 0x46e   :  { %4044 = vmatmul.mubr.bf16.vlgmr.msra.gmra.mxu0 %v5444_v39 }
 0x46f   :  { %4047 = vmatprep.mubr.bf16.mxu0 %v5445_v17  ;;  %4068 = vmatpush3.bf16.msra.mxu0 %v4962_v59  ;;  %v5222_v17 = vrot.slane %v2542_v22, %v2530_v44 }
 0x470   :  { %4069 = vmatprep.subr.bf16.mxu0 %v1997_v34 }
 0x473   :  { %4070 = vmatpush3.bf16.msra.mxu0 %v1997_v34 }
 0x474   :  { %4071 = vmatprep.subr.bf16.mxu0 %v4940_v3 }
 0x476   :  { %4048 = vmatmul.mubr.bf16.gmra.mxu0 %v5446_v46 }
 0x477   :  { %4072 = vmatpush3.bf16.msra.mxu0 %v4940_v3 }
 0x478   :  { %4073 = vmatprep.subr.bf16.mxu0 %v4944_v60 }
 0x47b   :  { %4074 = vmatpush3.bf16.msra.mxu0 %v4944_v60 }
 0x50e   :  { %v4029_v31 = vpop.f32.mrf.mxu0 }
 0x510   :  { %v1871_v45 = vpop.f32.mrf.mxu0 }
 0x512   :  { %v4013_v63 = vpop.f32.mrf.mxu1  ;;  %v4030_v58 = vpop.f32.mrf.mxu0 }
 0x513   :  { %v1907_v9 = vpack.c.bf16 %v4030_v58, %v4029_v31 }
 0x514   :  { %v1794_v6 = vpop.f32.mrf.mxu1  ;;  %v1874_v59 = vpop.f32.mrf.mxu0 }
 0x515   :  { %v1905_v61 = vpack.c.bf16 %v1874_v59, %v1871_v45 }
 0x516   :  { %v4014_v14 = vpop.f32.mrf.mxu1 }
 0x517   :  { %v1906_v29 = vpack.c.bf16 %v4014_v14, %v4013_v63 }
 0x518   :  { %v1797_v53 = vpop.f32.mrf.mxu1 }
 0x519   :  { %v1904_v51 = vpack.c.bf16 %v1797_v53, %v1794_v6 }
 0x51a   :  { %v4033_v28 = vpop.f32.mrf.mxu0 }
 0x51c   :  { %v1887_v25 = vpop.f32.mrf.mxu0 }
 0x51e   :  { %v4034_v49 = vpop.f32.mrf.mxu0 }
 0x51f   :  { %v1911_v48 = vpack.c.bf16 %v4034_v49, %v4033_v28 }
 0x520   :  { %v1890_v47 = vpop.f32.mrf.mxu0 }
 0x521   :  { %v4017_v3 = vpop.f32.mrf.mxu1  ;;  %1928 = vmatprep.subr.bf16.mxu1 %v1911_v48  ;;  %v1909_v50 = vpack.c.bf16 %v1890_v47, %v1887_v25 }
 0x523   :  { %v1810_v20 = vpop.f32.mrf.mxu1 }
 0x525   :  { %v4018_v60 = vpop.f32.mrf.mxu1 }
 0x526   :  { %v1910_v21 = vpack.c.bf16 %v4018_v60, %v4017_v3 }
 0x527   :  { %v1813_v54 = vpop.f32.mrf.mxu1 }
 0x528   :  { %1929 = vmatpush1.bf16.msra.mxu1 %v1910_v21  ;;  %v1908_v2 = vpack.c.bf16 %v1813_v54, %v1810_v20 }
 0x529   :  { %1930 = vmatprep.subr.bf16.mxu1 %v1909_v50 }
 0x52c   :  { %1931 = vmatpush1.bf16.msra.mxu1 %v1908_v2 }
 0x52d   :  { %1932 = vmatprep.subr.bf16.mxu1 %v1907_v9 }
 0x52e   :  { %v5145_v36 = vpop.f32.mrf.mxu0 }
 0x52f   :  { %v2139_v13 = vsel %vm242_vm0, %v5145_v36, -inf }
 0x530   :  { %2140 = vmax.xlane.f32.xlu0 %v2139_v13  ;;  %v5149_v16 = vpop.f32.mrf.mxu0  ;;  %1933 = vmatpush1.bf16.msra.mxu1 %v1906_v29 }
 0x531   :  { %1934 = vmatprep.subr.bf16.mxu1 %v1905_v61  ;;  %v2133_v41 = vsel %vm242_vm0, %v5149_v16, -inf }
 0x532   :  { %v5151_v23 = vpop.f32.mrf.mxu0 }
 0x533   :  { %v2142_v62 = vsel %vm242_vm0, %v5151_v23, -inf }
 0x534   :  { %2134 = vmax.xlane.f32.xlu0 %v2133_v41  ;;  %2143 = vmax.xlane.f32.xlu1 %v2142_v62  ;;  %v5157_v43 = vpop.f32.mrf.mxu0 }
 0x535   :  { %1935 = vmatpush1.bf16.msra.mxu1 %v1904_v51  ;;  %v2136_v38 = vsel %vm242_vm0, %v5157_v43, -inf }
 0x536   :  { %v5164_v18 = vpop.f32.mrf.mxu0  ;;  %4051 = vmatprep.subr.bf16.mxu1 %v4923_v37 }
 0x538   :  { %2137 = vmax.xlane.f32.xlu1 %v2136_v38  ;;  %3398 = vmatmul.mubr.msk.bf16.vlgmr.msra.gmra.mxu1 %vm242_vm0, %v5162_v7  ;;  %v5171_v57 = vpop.f32.mrf.mxu0 }
 0x539   :  { %4052 = vmatpush3.bf16.xpose.msra.mxu1 %v4923_v37  ;;  %4059 = vmatprep.mubr.bf16.mxu1 %v5447_v55  ;;  %v2145_v5 = vsel %vm242_vm0, %v5171_v57, -inf  ;;  %v5449_v37 = vld [vmem:[#allocation22_spill] sm:$0xff] }
 0x53a   :  { %4053 = vmatprep.subr.bf16.mxu1 %v4928_v15  ;;  %2146 = vmax.xlane.f32.xlu0 %v2145_v5  ;;  %v5180_v19 = vpop.f32.mrf.mxu0 }
 0x53c   :  { %v5182_v4 = vpop.f32.mrf.mxu0 }
 0x53d   :  { %v2148_v11 = vsel %vm242_vm0, %v5182_v4, -inf }
 0x53e   :  { %2149 = vmax.xlane.f32.xlu1 %v2148_v11 }
 0x541   :  { %4054 = vmatpush3.bf16.xpose.msra.mxu1 %v4928_v15  ;;  %v5450_v15 = vpack.c.bf16 %v4872_v0, %v5449_v37  ;;  %v2526_v0 = vsub.s32 0, %v2525_v33 }
 0x542   :  { %4055 = vmatprep.subr.bf16.mxu1 %v4904_v26 }
 0x543   :  { %v5219_v52 = vrot.slane %v2542_v22, %v2526_v0 }
 0x549   :  { %4056 = vmatpush3.bf16.xpose.msra.mxu1 %v4904_v26  ;;  %v5451_v26 = vld [vmem:[#allocation21_spill] sm:$0xff] }
 0x54a   :  { %4057 = vmatprep.subr.bf16.mxu1 %v4910_v10 }
 0x551   :  { %4058 = vmatpush3.bf16.xpose.msra.mxu1 %v4910_v10  ;;  %v5452_v10 = vld [vmem:[#allocation20_spill] sm:$0xff] }
 0x552   :  { %4083 = vmatprep.subr.bf16.mxu1 %v4966_v24  ;;  %v5453_v32 = vpack.c.bf16 %v5451_v26, %v5452_v10 }
 0x558   :  { %4060 = vmatmul.mubr.bf16.vlgmr.msra.gmra.mxu1 %v5448_v40 }
 0x559   :  { %4063 = vmatprep.mubr.bf16.mxu1 %v5450_v15  ;;  %4084 = vmatpush3.bf16.msra.mxu1 %v4966_v24  ;;  %v2522_v24 = vld [vmem:[%s5426_s11] sm:$0x3] }
 0x55a   :  { %4085 = vmatprep.subr.bf16.mxu1 %v2001_v35  ;;  %v5211_v56 = vrot.slane %v2522_v24, %v2526_v0  ;;  %v5216_v8 = vrot.slane %v2522_v24, %v2530_v44 }
 0x55d   :  { %4086 = vmatpush3.bf16.msra.mxu1 %v2001_v35 }
 0x55e   :  { %4087 = vmatprep.subr.bf16.mxu1 %v4942_v1 }
 0x560   :  { %4064 = vmatmul.mubr.bf16.gmra.mxu1 %v5453_v32 }
 0x561   :  { %4088 = vmatpush3.bf16.msra.mxu1 %v4942_v1 }
 0x562   :  { %4089 = vmatprep.subr.bf16.mxu1 %v5454_v42 }
 0x565   :  { %4090 = vmatpush3.bf16.msra.mxu1 %v5454_v42 }
 0x5b9   :  { %v2141_v20 = vpop.xlane.xlu0 %2140 }
 0x5ba   :  { %v2183_v54 = vsub.f32 %v5145_v36, %v2141_v20 }
 0x5bc   :  { %v2201_v41 = vmul.f32 1.442695, %v2183_v54 }
 0x5bd   :  { %v2144_v47 = vpop.xlane.xlu1 %2143  ;;  %v2135_v60 = vpop.xlane.xlu0 %2134 }
 0x5be   :  { %v2181_v21 = vsub.f32 %v5149_v16, %v2135_v60  ;;  %v2184_v62 = vsub.f32 %v5151_v23, %v2144_v47 }
 0x5c0   :  { %v2197_v29 = vmul.f32 1.442695, %v2181_v21  ;;  %v2203_v35 = vmul.f32 1.442695, %v2184_v62 }
 0x5c1   :  { %v2138_v50 = vpop.xlane.xlu1 %2137 }
 0x5c2   :  { %v2182_v2 = vsub.f32 %v5157_v43, %v2138_v50  ;;  %4315 = vpow2.f32 %v2197_v29 }
 0x5c3   :  { %v2147_v13 = vpop.xlane.xlu0 %2146  ;;  %4317 = vpow2.f32 %v2201_v41 }
 0x5c4   :  { %v2199_v38 = vmul.f32 1.442695, %v2182_v2  ;;  %v2185_v36 = vsub.f32 %v5171_v57, %v2147_v13 }
 0x5c6   :  { %4319 = vpow2.f32 %v2199_v38  ;;  %v2205_v40 = vmul.f32 1.442695, %v2185_v36 }
 0x5c7   :  { %v2150_v5 = vpop.xlane.xlu1 %2149  ;;  %4321 = vpow2.f32 %v2203_v35 }
 0x5c8   :  { %v2186_v37 = vsub.f32 %v5182_v4, %v2150_v5  ;;  %4323 = vpow2.f32 %v2205_v40  ;;  %v2151_v4 = vsel %vm242_vm0, %v5164_v18, -inf }
 0x5ca   :  { %v2207_v32 = vmul.f32 1.442695, %v2186_v37 }
 0x5cc   :  { %4325 = vpow2.f32 %v2207_v32 }
 0x5cf   :  { %v5262_v24 = vpop.eup %4315 }
 0x5d0   :  { %v5264_v44 = vpop.eup %4317 }
 0x5d3   :  { %v5266_v22 = vpop.eup %4319 }
 0x5f8   :  { %v1954_v1 = vpop.f32.mrf.mxu1 }
 0x5f9   :  { %v2534_v12 = vmul.f32 %v5211_v56, %v1954_v1  ;;  %v2229_v1 = vsel %vm242_vm0, %v5262_v24, 0.0 }
 0x5fa   :  { %v1956_v34 = vpop.f32.mrf.mxu1 }
 0x5fb   :  { %v2535_v39 = vmul.f32 %v5216_v8, %v1956_v34  ;;  %v2554_v31 = vadd.f32 %v5219_v52, %v2534_v12  ;;  %v2154_v12 = vsel %vm242_vm0, %v5180_v19, -inf  ;;  %v5272_v34 = vpop.eup %4321 }
 0x5fc   :  { %v1958_v46 = vpop.f32.mrf.mxu1 }
 0x5fd   :  { %v2536_v45 = vmul.f32 %v5211_v56, %v1958_v46  ;;  %v2555_v58 = vadd.f32 %v5222_v17, %v2535_v39  ;;  %v2562_v28 = vmax.f32 %v2554_v31, 0.0  ;;  %v2235_v39 = vsel %vm242_vm0, %v5264_v44, 0.0  ;;  %v5278_v31 = vpop.eup %4323 }
 0x5fe   :  { %v1960_v63 = vpop.f32.mrf.mxu1  ;;  %v2232_v46 = vsel %vm242_vm0, %v5266_v22, 0.0 }
 0x5ff   :  { %v2556_v6 = vadd.f32 %v5219_v52, %v2536_v45  ;;  %v2537_v59 = vmul.f32 %v5216_v8, %v1960_v63  ;;  %v2563_v49 = vmax.f32 %v2555_v58, 0.0  ;;  %v2241_v45 = vsel %vm242_vm0, %v5278_v31, 0.0  ;;  %v5284_v58 = vpop.eup %4325 }
 0x600   :  { %v2238_v63 = vsel %vm242_vm0, %v5272_v34, 0.0 }
 0x601   :  { %v2564_v14 = vmax.f32 %v2556_v6, 0.0  ;;  %v2557_v25 = vadd.f32 %v5222_v17, %v2537_v59  ;;  %v2244_v6 = vsel %vm242_vm0, %v5284_v58, 0.0 }
 0x603   :  { %v5230_v53 = vpack.c.bf16 %v2564_v14, %v2562_v28  ;;  %v2565_v48 = vmax.f32 %v2557_v25, 0.0 }
 0x605   :  { %v5232_v3 = vpack.c.bf16 %v2565_v48, %v2563_v49 }
 0x618   :  { %v5237_v9 = vpop.f32.mrf.mxu1 }
 0x619   :  { %v2163_v61 = vsel %vm242_vm0, %v5237_v9, -inf }
 0x61a   :  { %v5241_v51 = vpop.f32.mrf.mxu1  ;;  %2164 = vmax.xlane.f32.xlu0 %v2163_v61 }
 0x61b   :  { %v2157_v43 = vsel %vm242_vm0, %v5241_v51, -inf }
 0x61c   :  { %v5244_v16 = vpop.f32.mrf.mxu1 }
 0x61d   :  { %v2166_v55 = vsel %vm242_vm0, %v5244_v16, -inf }
 0x61e   :  { %v5251_v11 = vpop.f32.mrf.mxu1  ;;  %2158 = vmax.xlane.f32.xlu0 %v2157_v43  ;;  %2167 = vmax.xlane.f32.xlu1 %v2166_v55 }
 0x61f   :  { %v2160_v15 = vsel %vm242_vm0, %v5251_v11, -inf }
 0x620   :  { %v4065_v23 = vpop.f32.mrf.mxu1 }
 0x621   :  { %v2175_v57 = vsel %vm242_vm0, %v4065_v23, -inf }
 0x622   :  { %v2118_v26 = vpop.f32.mrf.mxu1  ;;  %2176 = vmax.xlane.f32.xlu0 %v2175_v57  ;;  %2161 = vmax.xlane.f32.xlu1 %v2160_v15 }
 0x623   :  { %v2169_v42 = vsel %vm242_vm0, %v2118_v26, -inf }
 0x624   :  { %v4066_v10 = vpop.f32.mrf.mxu1 }
 0x625   :  { %v2178_v30 = vsel %vm242_vm0, %v4066_v10, -inf }
 0x626   :  { %v2121_v33 = vpop.f32.mrf.mxu1  ;;  %2170 = vmax.xlane.f32.xlu0 %v2169_v42  ;;  %2179 = vmax.xlane.f32.xlu1 %v2178_v30 }
 0x627   :  { %v2172_v0 = vsel %vm242_vm0, %v2121_v33, -inf }
 0x62a   :  { %2152 = vmax.xlane.f32.xlu0 %v2151_v4  ;;  %2173 = vmax.xlane.f32.xlu1 %v2172_v0 }
 0x62e   :  { %2230 = vadd.xlane.f32.xlu0 %v2229_v1  ;;  %2155 = vmax.xlane.f32.xlu1 %v2154_v12 }
 0x632   :  { %2236 = vadd.xlane.f32.xlu0 %v2235_v39  ;;  %2233 = vadd.xlane.f32.xlu1 %v2232_v46 }
 0x636   :  { %2242 = vadd.xlane.f32.xlu0 %v2241_v45  ;;  %2239 = vadd.xlane.f32.xlu1 %v2238_v63 }
 0x63a   :  { %2245 = vadd.xlane.f32.xlu1 %v2244_v6 }
 0x6a3   :  { %v2165_v59 = vpop.xlane.xlu0 %2164 }
 0x6a4   :  { %v2191_v28 = vsub.f32 %v5237_v9, %v2165_v59 }
 0x6a6   :  { %v2217_v14 = vmul.f32 1.442695, %v2191_v28 }
 0x6a7   :  { %v2159_v25 = vpop.xlane.xlu0 %2158  ;;  %v2168_v49 = vpop.xlane.xlu1 %2167 }
 0x6a8   :  { %4327 = vpow2.f32 %v2217_v14  ;;  %v2189_v48 = vsub.f32 %v5241_v51, %v2159_v25  ;;  %v2192_v20 = vsub.f32 %v5244_v16, %v2168_v49 }
 0x6aa   :  { %v2213_v47 = vmul.f32 1.442695, %v2189_v48  ;;  %v2219_v60 = vmul.f32 1.442695, %v2192_v20 }
 0x6ab   :  { %v2177_v21 = vpop.xlane.xlu0 %2176  ;;  %v2162_v50 = vpop.xlane.xlu1 %2161 }
 0x6ac   :  { %4329 = vpow2.f32 %v2213_v47  ;;  %v2195_v54 = vsub.f32 %v4065_v23, %v2177_v21  ;;  %v2190_v2 = vsub.f32 %v5251_v11, %v2162_v50 }
 0x6ad   :  { %4331 = vpow2.f32 %v2219_v60 }
 0x6ae   :  { %v2225_v29 = vmul.f32 1.442695, %v2195_v54  ;;  %v2215_v61 = vmul.f32 1.442695, %v2190_v2 }
 0x6af   :  { %v2171_v9 = vpop.xlane.xlu0 %2170  ;;  %v2180_v13 = vpop.xlane.xlu1 %2179 }
 0x6b0   :  { %4333 = vpow2.f32 %v2225_v29  ;;  %v2193_v41 = vsub.f32 %v2118_v26, %v2171_v9  ;;  %v2196_v62 = vsub.f32 %v4066_v10, %v2180_v13 }
 0x6b1   :  { %4335 = vpow2.f32 %v2215_v61 }
 0x6b2   :  { %v2221_v51 = vmul.f32 1.442695, %v2193_v41  ;;  %v2227_v38 = vmul.f32 1.442695, %v2196_v62 }
 0x6b3   :  { %v2153_v16 = vpop.xlane.xlu0 %2152  ;;  %v2174_v36 = vpop.xlane.xlu1 %2173 }
 0x6b4   :  { %4337 = vpow2.f32 %v2221_v51  ;;  %v2187_v43 = vsub.f32 %v5164_v18, %v2153_v16  ;;  %v2194_v55 = vsub.f32 %v2121_v33, %v2174_v36 }
 0x6b5   :  { %v5293_v5 = vpop.eup %4327  ;;  %4339 = vpow2.f32 %v2227_v38 }
 0x6b6   :  { %v2209_v11 = vmul.f32 1.442695, %v2187_v43  ;;  %v2223_v35 = vmul.f32 1.442695, %v2194_v55  ;;  %v2259_v23 = vsel %vm242_vm0, %v5293_v5, 0.0 }
 0x6b7   :  { %2260 = vadd.xlane.f32.xlu0 %v2259_v23  ;;  %v2231_v40 = vpop.xlane.xlu0 %2230  ;;  %v2156_v37 = vpop.xlane.xlu1 %2155 }
 0x6b8   :  { %4341 = vpow2.f32 %v2209_v11  ;;  %v2188_v57 = vsub.f32 %v5180_v19, %v2156_v37 }
 0x6b9   :  { %v5298_v15 = vpop.eup %4329  ;;  %4343 = vpow2.f32 %v2223_v35 }
 0x6ba   :  { %v5300_v26 = vpop.eup %4331  ;;  %v2211_v18 = vmul.f32 1.442695, %v2188_v57  ;;  %v2253_v10 = vsel %vm242_vm0, %v5298_v15, 0.0  ;;  %4345 = vrcp.f32 %v2231_v40 }
 0x6bb   :  { %2254 = vadd.xlane.f32.xlu0 %v2253_v10  ;;  %v2237_v32 = vpop.xlane.xlu0 %2236  ;;  %v2262_v42 = vsel %vm242_vm0, %v5300_v26, 0.0  ;;  %v2234_v30 = vpop.xlane.xlu1 %2233 }
 0x6bc   :  { %4347 = vpow2.f32 %v2211_v18  ;;  %2263 = vadd.xlane.f32.xlu1 %v2262_v42 }
 0x6bd   :  { %v5306_v33 = vpop.eup %4333  ;;  %4349 = vrcp.f32 %v2234_v30  ;;  %v4186_v30 = vld [vmem:[#allocation13 + $0x38] sm:$0xff]  }
 0x6be   :  { %v5308_v19 = vpop.eup %4335  ;;  %v2271_v4 = vsel %vm242_vm0, %v5306_v33, 0.0  ;;  %4351 = vrcp.f32 %v2237_v32 }
 0x6bf   :  { %2272 = vadd.xlane.f32.xlu0 %v2271_v4  ;;  %v2243_v0 = vpop.xlane.xlu0 %2242  ;;  %v2256_v1 = vsel %vm242_vm0, %v5308_v19, 0.0  ;;  %v2240_v12 = vpop.xlane.xlu1 %2239 }
 0x6c0   :  { %2257 = vadd.xlane.f32.xlu1 %v2256_v1  ;;  %4353 = vrcp.f32 %v2240_v12 }
 0x6c1   :  { %v5314_v39 = vpop.eup %4337  ;;  %4355 = vrcp.f32 %v2243_v0  ;;  %v4187_v0 = vld [vmem:[#allocation13 + $0x70] sm:$0xff]  }
 0x6c2   :  { %v5316_v46 = vpop.eup %4339  ;;  %v2265_v45 = vsel %vm242_vm0, %v5314_v39, 0.0 }
 0x6c3   :  { %2266 = vadd.xlane.f32.xlu0 %v2265_v45  ;;  %v2274_v63 = vsel %vm242_vm0, %v5316_v46, 0.0  ;;  %v2246_v6 = vpop.xlane.xlu1 %2245 }
 0x6c4   :  { %2275 = vadd.xlane.f32.xlu1 %v2274_v63  ;;  %4357 = vrcp.f32 %v2246_v6  ;;  %v4188_v63 = vld [vmem:[#allocation13 + $0x30] sm:$0xff]  }
 0x6c5   :  { %v5322_v59 = vpop.eup %4341 }
 0x6c6   :  { %v5324_v28 = vpop.eup %4343  ;;  %v2247_v14 = vsel %vm242_vm0, %v5322_v59, 0.0 }
 0x6c7   :  { %2248 = vadd.xlane.f32.xlu0 %v2247_v14  ;;  %v2268_v25 = vsel %vm242_vm0, %v5324_v28, 0.0  ;;  %v4346_v49 = vpop.eup %4345 }
 0x6c8   :  { %2269 = vadd.xlane.f32.xlu1 %v2268_v25  ;;  %v2293_v21 = vmul.f32 %v4346_v49, %v5262_v24 }
 0x6c9   :  { %v5330_v48 = vpop.eup %4347 }
 0x6ca   :  { %v2250_v20 = vsel %vm242_vm0, %v5330_v48, 0.0  ;;  %v4350_v47 = vpop.eup %4349 }
 0x6cb   :  { %v4352_v60 = vpop.eup %4351  ;;  %v2294_v50 = vmul.f32 %v4350_v47, %v5266_v22  ;;  %v4185_v22 = vld [vmem:[#allocation13 + $0x78] sm:$0xff]  }
 0x6cc   :  { %2251 = vadd.xlane.f32.xlu1 %v2250_v20  ;;  %v2295_v61 = vmul.f32 %v4352_v60, %v5264_v44  ;;  %3665 = vmatprep.subr.bf16.mxu1 %v4185_v22  ;;  %v4190_v20 = vld [vmem:[#allocation13 + $0x28] sm:$0xff]  }
 0x6cd   :  { %v4354_v54 = vpop.eup %4353  ;;  %v2309_v2 = vpack.c.bf16 %v2294_v50, %v2293_v21  ;;  %v4191_v21 = vld [vmem:[#allocation13 + $0x60] sm:$0xff]  }
 0x6ce   :  { %v4356_v29 = vpop.eup %4355  ;;  %v2296_v9 = vmul.f32 %v4354_v54, %v5272_v34  ;;  %v4194_v54 = vld [vmem:[#allocation13 + $0x18] sm:$0xff]  }
 0x6cf   :  { %4075 = vmatprep.mubr.msk.bf16.mxu0 %vm242_vm0, %v2309_v2  ;;  %v2297_v62 = vmul.f32 %v4356_v29, %v5278_v31  ;;  %v4195_v2 = vld [vmem:[#allocation13 + $0x50] sm:$0xff]   ;;  %v4198_v29 = vld [vmem:[#allocation13 + $0x8] sm:$0xff]  }
 0x6d0   :  { %v2310_v41 = vpack.c.bf16 %v2296_v9, %v2295_v61  ;;  %v4200_v61 = vld [vmem:[#allocation13] sm:$0xff]   ;;  %v4208_v9 = vld [vmem:[#allocation2 + $0xf8] sm:$0xff]  }
 0x6d1   :  { %v4358_v13 = vpop.eup %4357 }
 0x6d2   :  { %v2298_v51 = vmul.f32 %v4358_v13, %v5284_v58  ;;  %4076 = vmatmul.mubr.msk.bf16.vlgmr.msra.gmra.mxu0 %vm242_vm0, %v2310_v41  ;;  %v4212_v13 = vld [vmem:[#allocation2 + $0xf0] sm:$0xff]  }
 0x6d3   :  { %v4214_v41 = vld [vmem:[#allocation2 + $0xb0] sm:$0xff]  }
 0x6d4   :  { %v2311_v24 = vpack.c.bf16 %v2298_v51, %v2297_v62 }
 0x6d6   :  { %4079 = vmatprep.mubr.msk.bf16.mxu0 %vm242_vm0, %v2311_v24 }
 0x740   :  { %v2261_v38 = vpop.xlane.xlu0 %2260 }
 0x744   :  { %v2255_v16 = vpop.xlane.xlu0 %2254 }
 0x745   :  { %v2264_v44 = vpop.xlane.xlu1 %2263 }
 0x746   :  { %4359 = vrcp.f32 %v2264_v44 }
 0x747   :  { %4361 = vrcp.f32 %v2255_v16 }
 0x748   :  { %v2273_v34 = vpop.xlane.xlu0 %2272  ;;  %4363 = vrcp.f32 %v2261_v38 }
 0x749   :  { %v2258_v36 = vpop.xlane.xlu1 %2257 }
 0x74a   :  { %4365 = vrcp.f32 %v2258_v36 }
 0x74c   :  { %v2267_v43 = vpop.xlane.xlu0 %2266 }
 0x74d   :  { %v2276_v31 = vpop.xlane.xlu1 %2275 }
 0x74e   :  { %4367 = vrcp.f32 %v2276_v31 }
 0x74f   :  { %4369 = vrcp.f32 %v2267_v43 }
 0x750   :  { %4371 = vrcp.f32 %v2273_v34  ;;  %v2249_v58 = vpop.xlane.xlu0 %2248 }
 0x751   :  { %v2270_v55 = vpop.xlane.xlu1 %2269 }
 0x752   :  { %4373 = vrcp.f32 %v2270_v55 }
 0x753   :  { %v4360_v11 = vpop.eup %4359  ;;  %4375 = vrcp.f32 %v2249_v58 }
 0x754   :  { %v4362_v35 = vpop.eup %4361  ;;  %v2304_v57 = vmul.f32 %v4360_v11, %v5300_v26 }
 0x755   :  { %v2252_v23 = vpop.xlane.xlu1 %2251  ;;  %v4364_v40 = vpop.eup %4363  ;;  %v2301_v18 = vmul.f32 %v4362_v35, %v5298_v15  ;;  %v4189_v15 = vld [vmem:[#allocation13 + $0x68] sm:$0xff]  }
 0x756   :  { %4377 = vrcp.f32 %v2252_v23  ;;  %v2303_v32 = vmul.f32 %v4364_v40, %v5293_v5 }
 0x757   :  { %v4366_v37 = vpop.eup %4365 }
 0x758   :  { %v2302_v10 = vmul.f32 %v4366_v37, %v5308_v19  ;;  %v2314_v4 = vpack.c.bf16 %v2304_v57, %v2303_v32 }
 0x75a   :  { %v2313_v42 = vpack.c.bf16 %v2302_v10, %v2301_v18 }
 0x75b   :  { %v4368_v1 = vpop.eup %4367 }
 0x75c   :  { %4091 = vmatprep.mubr.msk.bf16.mxu1 %vm242_vm0, %v2313_v42  ;;  %v4370_v12 = vpop.eup %4369  ;;  %v2308_v19 = vmul.f32 %v4368_v1, %v5316_v46  ;;  %v4201_v42 = vld [vmem:[#allocation2 + $0x78] sm:$0xff]   ;;  %v4204_v1 = vld [vmem:[#allocation2 + $0x30] sm:$0xff]  }
 0x75d   :  { %4092 = vmatmul.mubr.msk.bf16.vlgmr.msra.gmra.mxu1 %vm242_vm0, %v2314_v4  ;;  %v4372_v45 = vpop.eup %4371  ;;  %v2305_v5 = vmul.f32 %v4370_v12, %v5314_v39  ;;  %v4202_v4 = vld [vmem:[#allocation2 + $0x38] sm:$0xff]   ;;  %v4205_v12 = vld [vmem:[#allocation2 + $0x68] sm:$0xff]  }
 0x75e   :  { %3666 = vmatpush3.bf16.msra.mxu1 %v4186_v30  ;;  %v2307_v25 = vmul.f32 %v4372_v45, %v5306_v33  ;;  %v4192_v33 = vld [vmem:[#allocation13 + $0x20] sm:$0xff]   ;;  %v4206_v45 = vld [vmem:[#allocation2 + $0x28] sm:$0xff]  }
 0x75f   :  { %v4374_v26 = vpop.eup %4373  ;;  %3667 = vmatprep.subr.bf16.mxu1 %v4187_v0  ;;  %v4203_v0 = vld [vmem:[#allocation2 + $0x70] sm:$0xff]  }
 0x760   :  { %v2306_v6 = vmul.f32 %v4374_v26, %v5324_v28  ;;  %v4376_v14 = vpop.eup %4375  ;;  %v2316_v60 = vpack.c.bf16 %v2308_v19, %v2307_v25  ;;  %v4193_v28 = vld [vmem:[#allocation13 + $0x58] sm:$0xff]   ;;  %v4209_v26 = vld [vmem:[#allocation2 + $0x20] sm:$0xff]   ;;  %v4219_v25 = vld [vmem:[#allocation2 + $0x48] sm:$0xff]  }
 0x761   :  { %v2299_v50 = vmul.f32 %v4376_v14, %v5322_v59  ;;  %v4196_v59 = vld [vmem:[#allocation13 + $0x10] sm:$0xff]   ;;  %v4213_v19 = vld [vmem:[#allocation2 + $0x18] sm:$0xff]  }
 0x762   :  { %3668 = vmatpush3.bf16.msra.mxu1 %v4188_v63  ;;  %v2315_v49 = vpack.c.bf16 %v2306_v6, %v2305_v5  ;;  %v4207_v63 = vld [vmem:[#allocation2 + $0x60] sm:$0xff]   ;;  %v4215_v5 = vld [vmem:[#allocation2 + $0x50] sm:$0xff]   ;;  %v4216_v6 = vld [vmem:[#allocation2 + $0xe8] sm:$0xff]  }
 0x763   :  { %v4378_v47 = vpop.eup %4377  ;;  %3669 = vmatprep.subr.bf16.mxu1 %v4189_v15  ;;  %v4211_v15 = vld [vmem:[#allocation2 + $0x58] sm:$0xff]   ;;  %v4217_v14 = vld [vmem:[#allocation2 + $0x10] sm:$0xff]  }
 0x764   :  { %4095 = vmatprep.mubr.msk.bf16.mxu1 %vm242_vm0, %v2315_v49  ;;  %v2300_v46 = vmul.f32 %v4378_v47, %v5330_v48  ;;  %v4197_v48 = vld [vmem:[#allocation13 + $0x48] sm:$0xff]   ;;  %v4220_v49 = vld [vmem:[#allocation2 + $0xe0] sm:$0xff]  }
 0x765   :  { %4096 = vmatmul.mubr.msk.bf16.gmra.mxu1 %vm242_vm0, %v2316_v60  ;;  %v4222_v47 = vld [vmem:[#allocation2 + $0xa0] sm:$0xff]  }
 0x766   :  { %3670 = vmatpush3.bf16.msra.mxu1 %v4190_v20  ;;  %2741 = vmatprep.mubr.bf16.mxu1 %v5232_v3  ;;  %v2312_v39 = vpack.c.bf16 %v2300_v46, %v2299_v50  ;;  %v4199_v3 = vld [vmem:[#allocation13 + $0x40] sm:$0xff]   ;;  %v4221_v20 = vld [vmem:[#allocation2 + $0x8] sm:$0xff]   ;;  %v4226_v46 = vld [vmem:[#allocation2 + $0x98] sm:$0xff]  }
 0x767   :  { %3671 = vmatprep.subr.bf16.mxu1 %v4191_v21  ;;  %v4223_v60 = vld [vmem:[#allocation2 + $0x40] sm:$0xff]   ;;  %v4224_v21 = vld [vmem:[#allocation2 + $0xd8] sm:$0xff]  }
 0x768   :  { %4080 = vmatmul.mubr.msk.bf16.gmra.mxu0 %vm242_vm0, %v2312_v39  ;;  %v4225_v50 = vld [vmem:[#allocation2] sm:$0xff]  }
 0x769   :  { %2511 = vmatprep.mubr.bf16.mxu0 %v4560_v27  ;;  %v4210_v27 = vld [vmem:[#allocation2 + $0xb8] sm:$0xff]  }
 0x76a   :  { %3672 = vmatpush3.bf16.msra.mxu1 %v4192_v33  ;;  %v4229_v39 = vld [vmem:[%s5416_s1 + $0x4] ss:$20 sps:$4 sm:$0xff]   ;;  %v4227_v33 = vld [vmem:[%s5416_s1] ss:$20 sps:$4 sm:$0xff]  }
 0x76b   :  { %3673 = vmatprep.subr.bf16.mxu1 %v4193_v28  ;;  %v4230_v28 = vld [vmem:[#allocation2 + $0xd0] sm:$0xff]  }
 0x76e   :  { %3674 = vmatpush3.bf16.msra.mxu1 %v4194_v54  ;;  %v4231_v54 = vld [vmem:[#allocation2 + $0x118] sm:$0xff]  }
 0x76f   :  { %3675 = vmatprep.subr.bf16.mxu1 %v4195_v2  ;;  %v4232_v2 = vld [vmem:[#allocation2 + $0x90] sm:$0xff]  }
 0x772   :  { %3676 = vmatpush3.bf16.msra.mxu1 %v4196_v59  ;;  %v4233_v59 = vld [vmem:[#allocation2 + $0xc8] sm:$0xff]  }
 0x773   :  { %3677 = vmatprep.subr.bf16.mxu1 %v4197_v48  ;;  %v4234_v48 = vld [vmem:[#allocation2 + $0x110] sm:$0xff]  }
 0x776   :  { %3678 = vmatpush3.bf16.msra.mxu1 %v4198_v29  ;;  %v4235_v29 = vld [vmem:[#allocation2 + $0x88] sm:$0xff]  }
 0x777   :  { %3679 = vmatprep.subr.bf16.mxu1 %v4199_v3  ;;  %v4236_v3 = vld [vmem:[%s5416_s1 + $0x2c] ss:$20 sps:$4 sm:$0xff]  }
 0x77a   :  { %3680 = vmatpush3.bf16.msra.mxu1 %v4200_v61  ;;  %v4238_v61 = vld [vmem:[%s5416_s1 + $0x28] ss:$20 sps:$4 sm:$0xff]  }
 0x77b   :  { %3721 = vmatprep.subr.bf16.mxu1 %v4208_v9  ;;  %v4239_v9 = vld [vmem:[#allocation2 + $0xc0] sm:$0xff]  }
 0x77d   :  { %2742 = vmatmul.mubr.bf16.vlgmr.msra.gmra.mxu1 %v5230_v53 }
 0x77e   :  { %3722 = vmatpush3.bf16.msra.mxu1 %v4210_v27  ;;  %v4240_v27 = vld [vmem:[#allocation2 + $0x108] sm:$0xff]  }
 0x77f   :  { %3723 = vmatprep.subr.bf16.mxu1 %v4212_v13  ;;  %v4241_v13 = vld [vmem:[#allocation2 + $0x80] sm:$0xff]  }
 0x782   :  { %3724 = vmatpush3.bf16.msra.mxu1 %v4214_v41  ;;  %v4245_v41 = vld [vmem:[#allocation2 + $0x100] sm:$0xff]  }
 0x783   :  { %3725 = vmatprep.subr.bf16.mxu1 %v4216_v6 }
 0x792   :  { %v4077_v62 = vpop.f32.mrf.mxu0 }
 0x794   :  { %v2363_v24 = vpop.f32.mrf.mxu0 }
 0x796   :  { %v4078_v16 = vpop.f32.mrf.mxu0 }
 0x797   :  { %v2473_v10 = vpack.c.bf16 %v4078_v16, %v4077_v62  ;;  %v4246_v62 = vld [vmem:[%s5416_s1 + $0x10] ss:$20 sps:$4 sm:$0xff]  }
 0x798   :  { %v2366_v36 = vpop.f32.mrf.mxu0 }
 0x799   :  { %v2471_v30 = vpack.c.bf16 %v2366_v36, %v2363_v24 }
 0x81d   :  { %v4093_v51 = vpop.f32.mrf.mxu1 }
 0x81f   :  { %v2440_v22 = vpop.f32.mrf.mxu1 }
 0x821   :  { %v4094_v38 = vpop.f32.mrf.mxu1 }
 0x822   :  { %v2474_v18 = vpack.c.bf16 %v4094_v38, %v4093_v51  ;;  %v4247_v51 = vld [vmem:[%s5416_s1 + $0x38] ss:$20 sps:$4 sm:$0xff]  }
 0x823   :  { %v2443_v44 = vpop.f32.mrf.mxu1 }
 0x824   :  { %v2472_v32 = vpack.c.bf16 %v2443_v44, %v2440_v22 }
 0x825   :  { %v4097_v34 = vpop.f32.mrf.mxu1 }
 0x827   :  { %v2456_v43 = vpop.f32.mrf.mxu1 }
 0x828   :  { %v4081_v31 = vpop.f32.mrf.mxu0 }
 0x829   :  { %v4098_v53 = vpop.f32.mrf.mxu1 }
 0x82a   :  { %v2478_v58 = vpack.c.bf16 %v4098_v53, %v4097_v34  ;;  %v2379_v55 = vpop.f32.mrf.mxu0 }
 0x82b   :  { %v2459_v11 = vpop.f32.mrf.mxu1 }
 0x82c   :  { %v4082_v35 = vpop.f32.mrf.mxu0  ;;  %2487 = vmatprep.subr.bf16.mxu0 %v2478_v58  ;;  %v2476_v40 = vpack.c.bf16 %v2459_v11, %v2456_v43 }
 0x82d   :  { %v2477_v23 = vpack.c.bf16 %v4082_v35, %v4081_v31 }
 0x82e   :  { %v2382_v37 = vpop.f32.mrf.mxu0 }
 0x82f   :  { %2488 = vmatpush1.bf16.msra.mxu0 %v2477_v23  ;;  %v2475_v57 = vpack.c.bf16 %v2382_v37, %v2379_v55 }
 0x830   :  { %2489 = vmatprep.subr.bf16.mxu0 %v2476_v40 }
 0x833   :  { %2490 = vmatpush1.bf16.msra.mxu0 %v2475_v57 }
 0x834   :  { %2491 = vmatprep.subr.bf16.mxu0 %v2474_v18 }
 0x837   :  { %2492 = vmatpush1.bf16.msra.mxu0 %v2473_v10 }
 0x838   :  { %2493 = vmatprep.subr.bf16.mxu0 %v2472_v32 }
 0x83b   :  { %2494 = vmatpush1.bf16.msra.mxu0 %v2471_v30 }
 0x83c   :  { %3693 = vmatprep.subr.bf16.mxu0 %v4201_v42 }
 0x83d   :  { %v3681_v30 = vpop.f32.mrf.mxu1 }
 0x83e   :  { %3407 = vmatmul.mubr.msk.bf16.vlgmr.msra.gmra.mxu0 %vm242_vm0, %v5162_v7  ;;  %v4218_v7 = vld [vmem:[#allocation2 + $0xa8] sm:$0xff]  }
 0x83f   :  { %3694 = vmatpush3.bf16.msra.mxu0 %v4202_v4  ;;  %3726 = vmatpush3.bf16.msra.mxu1 %v4218_v7 }
 0x840   :  { %3695 = vmatprep.subr.bf16.mxu0 %v4203_v0  ;;  %3727 = vmatprep.subr.bf16.mxu1 %v4220_v49  ;;  %v3682_v0 = vpop.f32.mrf.mxu1 }
 0x841   :  { %3153 = vmatprep.mubr.bf16.mxu0 %v4229_v39 }
 0x843   :  { %3696 = vmatpush3.bf16.msra.mxu0 %v4204_v1  ;;  %3728 = vmatpush3.bf16.msra.mxu1 %v4222_v47 }
 0x844   :  { %3697 = vmatprep.subr.bf16.mxu0 %v4205_v12  ;;  %3729 = vmatprep.subr.bf16.mxu1 %v4224_v21  ;;  %v3684_v12 = vpop.f32.mrf.mxu1 }
 0x847   :  { %3698 = vmatpush3.bf16.msra.mxu0 %v4206_v45  ;;  %3730 = vmatpush3.bf16.msra.mxu1 %v4226_v46 }
 0x848   :  { %3699 = vmatprep.subr.bf16.mxu0 %v4207_v63  ;;  %3731 = vmatprep.subr.bf16.mxu1 %v4230_v28  ;;  %v3685_v63 = vpop.f32.mrf.mxu1  ;;  %v3683_v28 = vadd.f32 %v3682_v0, %v3681_v30 }
 0x84b   :  { %3700 = vmatpush3.bf16.msra.mxu0 %v4209_v26  ;;  %3732 = vmatpush3.bf16.msra.mxu1 %v4232_v2 }
 0x84c   :  { %3701 = vmatprep.subr.bf16.mxu0 %v4211_v15  ;;  %3733 = vmatprep.subr.bf16.mxu1 %v4233_v59 }
 0x84f   :  { %3702 = vmatpush3.bf16.msra.mxu0 %v4213_v19  ;;  %3734 = vmatpush3.bf16.msra.mxu1 %v4235_v29 }
 0x850   :  { %3703 = vmatprep.subr.bf16.mxu0 %v4215_v5  ;;  %3735 = vmatprep.subr.bf16.mxu1 %v4239_v9 }
 0x853   :  { %3704 = vmatpush3.bf16.msra.mxu0 %v4217_v14  ;;  %3736 = vmatpush3.bf16.msra.mxu1 %v4241_v13 }
 0x854   :  { %3705 = vmatprep.subr.bf16.mxu0 %v4219_v25  ;;  %v3425_v25 = vld [vmem:[%s5418_s3] ss:$0 sm:$0xff]  ;;  %s4561_s3 = smov [#allocation14]  }
 0x857   :  { %3706 = vmatpush3.bf16.msra.mxu0 %v4221_v20 }
 0x858   :  { %3707 = vmatprep.subr.bf16.mxu0 %v4223_v60 }
 0x85b   :  { %3708 = vmatpush3.bf16.msra.mxu0 %v4225_v50 }
 0x85c   :  { %4099 = vmatprep.subr.bf16.mxu0 %v4231_v54 }
 0x85e   :  { %3154 = vmatmul.mubr.bf16.vlgmr.msra.gmra.mxu0 %v4227_v33 }
 0x85f   :  { %4100 = vmatpush3.bf16.msra.mxu0 %v4231_v54  ;;  %3161 = vmatprep.mubr.bf16.mxu0 %v4236_v3  ;;  %v3408_v3 = vld [vmem:[%s5429_s14] ss:$0 sm:$0xff]  ;;  %s3305_s14 = sshll.u32 %s4561_s3, 4  ;;  %s3306_s14 = int_to_ptr.vmem [resolvable:$true] %s3305_s14 }
 0x860   :  { %4101 = vmatprep.subr.bf16.mxu0 %v4234_v48  ;;  %s4519_s25 = scalar_lea.vmem %s3306_s14, 256  ;;  %p4524_p8 = scmp.lt.s32.totalorder %s3306_s14, %s3306_s14 }
 0x861   :  { %p4520_p7 = scmp.ne.s32.totalorder %s3306_s14, %s4519_s25  ;;  %p4525_p9 = scmp.lt.s32.totalorder %s4519_s25, %s4519_s25 }
 0x863   :  { %4102 = vmatpush3.bf16.msra.mxu0 %v4234_v48  ;;  %p4526_p10 = por %p4525_p9, %p4524_p8 }
 0x864   :  { %4103 = vmatprep.subr.bf16.mxu0 %v4240_v27 }
 0x865   :  { %p4527_p11 = pnand %p4526_p10, %p4520_p7 }
 0x866   :  { %3162 = vmatmul.mubr.bf16.gmra.mxu0 %v4238_v61 }
 0x867   :  { %4104 = vmatpush3.bf16.msra.mxu0 %v4240_v27  ;;  %4107 = vmatprep.mubr.msk.bf16.mxu0 %vm242_vm0, %v4246_v62  ;;  %v3686_v27 = vadd.f32 %v3685_v63, %v3684_v12 }
 0x868   :  { %4105 = vmatprep.subr.bf16.mxu0 %v4245_v41 }
 0x86b   :  { %4106 = vmatpush3.bf16.msra.mxu0 %v4245_v41 }
 0x86e   :  { %4108 = vmatmul.mubr.msk.bf16.vlgmr.msra.gmra.mxu0 %vm242_vm0, %v4247_v51 }
 0x8fe   :  { %v2513_v24 = vpop.f32.mrf.mxu0 }
 0x8ff   :  { %v2538_v16 = vmul.f32 %v5211_v56, %v2513_v24  ;;  %v2744_v24 = vadd.f32 %v3683_v28, %v3408_v3 }
 0x900   :  { %v2515_v22 = vpop.f32.mrf.mxu0 }
 0x901   :  { %v2539_v38 = vmul.f32 %v5216_v8, %v2515_v22  ;;  %v2558_v58 = vadd.f32 %v5219_v52, %v2538_v16 }
 0x902   :  { %v2517_v44 = vpop.f32.mrf.mxu0 }
 0x903   :  { %v2540_v34 = vmul.f32 %v5211_v56, %v2517_v44  ;;  %v2559_v43 = vadd.f32 %v5222_v17, %v2539_v38  ;;  %v2566_v40 = vmax.f32 %v2558_v58, 0.0  ;;  %v4244_v56 = vld [vmem:[%s5416_s1 + $0xc] ss:$20 sps:$4 sm:$0xff]  }
 0x904   :  { %v2519_v36 = vpop.f32.mrf.mxu0 }
 0x905   :  { %v2560_v31 = vadd.f32 %v5219_v52, %v2540_v34  ;;  %v2541_v53 = vmul.f32 %v5216_v8, %v2519_v36  ;;  %v2567_v35 = vmax.f32 %v2559_v43, 0.0  ;;  %v4242_v8 = vld [vmem:[%s5416_s1 + $0x8] ss:$20 sps:$4 sm:$0xff]   ;;  %v2747_v34 = vadd.f32 %v3686_v27, %v3408_v3 }
 0x906   :  { %v4248_v52 = vld [vmem:[%s5416_s1 + $0x34] ss:$20 sps:$4 sm:$0xff]  }
 0x907   :  { %v2561_v55 = vadd.f32 %v5222_v17, %v2541_v53  ;;  %v2568_v11 = vmax.f32 %v2560_v31, 0.0  ;;  %v4250_v17 = vld [vmem:[%s5416_s1 + $0x30] ss:$20 sps:$4 sm:$0xff]  }
 0x909   :  { %v2569_v23 = vmax.f32 %v2561_v55, 0.0  ;;  %v2572_v57 = vpack.c.bf16 %v2568_v11, %v2566_v40 }
 0x90b   :  { %v2573_v37 = vpack.c.bf16 %v2569_v23, %v2567_v35 }
 0x90d   :  { %2749 = vmatprep.mubr.bf16.mxu1 %v2573_v37 }
 0x90e   :  { %2750 = vmatmul.mubr.bf16.gmra.mxu1 %v2572_v57 }
 0x90f   :  { %3202 = vmatprep.mubr.bf16.mxu1 %v4244_v56 }
 0x916   :  { %3203 = vmatmul.mubr.bf16.vlgmr.msra.gmra.mxu1 %v4242_v8 }
 0x917   :  { %3210 = vmatprep.mubr.bf16.mxu1 %v4248_v52 }
 0x91e   :  { %3211 = vmatmul.mubr.bf16.gmra.mxu1 %v4250_v17  ;;  %v3709_v18 = vpop.f32.mrf.mxu0 }
 0x920   :  { %v3710_v10 = vpop.f32.mrf.mxu0 }
 0x921   :  { %v3711_v7 = vadd.f32 %v3710_v10, %v3709_v18 }
 0x922   :  { %v3712_v32 = vpop.f32.mrf.mxu0 }
 0x923   :  { %v3156_v60 = vadd.f32 %v3711_v7, %v3425_v25 }
 0x924   :  { %v3713_v42 = vpop.f32.mrf.mxu0 }
 0x925   :  { %v3714_v21 = vadd.f32 %v3713_v42, %v3712_v32 }
 0x926   :  { %v3715_v4 = vpop.f32.mrf.mxu0 }
 0x927   :  { %v3159_v2 = vadd.f32 %v3714_v21, %v3425_v25 }
 0x928   :  { %v3716_v1 = vpop.f32.mrf.mxu0 }
 0x929   :  { %v3717_v59 = vadd.f32 %v3716_v1, %v3715_v4 }
 0x92a   :  { %v3718_v45 = vpop.f32.mrf.mxu0 }
 0x92b   :  { %v3164_v22 = vadd.f32 %v3717_v59, %v3425_v25 }
 0x92c   :  { %v3719_v15 = vpop.f32.mrf.mxu0 }
 0x92d   :  { %v3720_v62 = vadd.f32 %v3719_v15, %v3718_v45 }
 0x92e   :  { %v4109_v6 = vpop.f32.mrf.mxu0 }
 0x92f   :  { %v3167_v53 = vadd.f32 %v3720_v62, %v3425_v25 }
 0x930   :  { %v3253_v20 = vpop.f32.mrf.mxu0 }
 0x932   :  { %v4110_v39 = vpop.f32.mrf.mxu0 }
 0x934   :  { %v3256_v9 = vpop.f32.mrf.mxu0 }
 0x9ce   :  { %v3687_v26 = vpop.f32.mrf.mxu1 }
 0x9d0   :  { %v3688_v19 = vpop.f32.mrf.mxu1 }
 0x9d1   :  { %v3689_v55 = vadd.f32 %v3688_v19, %v3687_v26 }
 0x9d2   :  { %v3690_v5 = vpop.f32.mrf.mxu1 }
 0x9d3   :  { %v2752_v52 = vadd.f32 %v3689_v55, %v3408_v3 }
 0x9d4   :  { %v3691_v14 = vpop.f32.mrf.mxu1 }
 0x9d5   :  { %v3692_v40 = vadd.f32 %v3691_v14, %v3690_v5 }
 0x9d6   :  { %v3737_v49 = vpop.f32.mrf.mxu1 }
 0x9d7   :  { %v2755_v10 = vadd.f32 %v3692_v40, %v3408_v3 }
 0x9d8   :  { %v3738_v47 = vpop.f32.mrf.mxu1 }
 0x9d9   :  { %v3739_v50 = vadd.f32 %v3738_v47, %v3737_v49 }
 0x9da   :  { %v3740_v46 = vpop.f32.mrf.mxu1 }
 0x9db   :  { %v3205_v33 = vadd.f32 %v3739_v50, %v3156_v60 }
 0x9dc   :  { %v3741_v54 = vpop.f32.mrf.mxu1 }
 0x9dd   :  { %v3742_v48 = vadd.f32 %v3741_v54, %v3740_v46  ;;  %v3254_v29 = vadd.f32 %v3253_v20, %v3205_v33 }
 0x9de   :  { %v3743_v61 = vpop.f32.mrf.mxu1 }
 0x9df   :  { %v3268_v13 = vmax.f32 %v3254_v29, 0.0  ;;  %v3208_v41 = vadd.f32 %v3742_v48, %v3159_v2 }
 0x9e0   :  { %v3744_v51 = vpop.f32.mrf.mxu1 }
 0x9e1   :  { %v3745_v38 = vadd.f32 %v3744_v51, %v3743_v61  ;;  %v3257_v16 = vadd.f32 %v3256_v9, %v3208_v41  ;;  %v3272_v36 = vadd.f32 %v3268_v13, %v2744_v24 }
 0x9e2   :  { %v3746_v44 = vpop.f32.mrf.mxu1 }
 0x9e3   :  { %v3213_v43 = vadd.f32 %v3745_v38, %v3164_v22  ;;  %v3269_v31 = vmax.f32 %v3257_v16, 0.0  ;;  %v3276_v37 = vmax.f32 %v3272_v36, 0.0 }
 0x9e4   :  { %v3747_v58 = vpop.f32.mrf.mxu1 }
 0x9e5   :  { %v3262_v11 = vadd.f32 %v4109_v6, %v3213_v43  ;;  %v3273_v35 = vadd.f32 %v3269_v31, %v2747_v34  ;;  %v3748_v23 = vadd.f32 %v3747_v58, %v3746_v44 }
 0x9e7   :  { %v3270_v56 = vmax.f32 %v3262_v11, 0.0  ;;  %v3277_v57 = vmax.f32 %v3273_v35, 0.0  ;;  %v3216_v8 = vadd.f32 %v3748_v23, %v3167_v53 }
 0x9e9   :  { %v3265_v17 = vadd.f32 %v4110_v39, %v3216_v8  ;;  %v3485_v18 = vpack.c.bf16 %v3277_v57, %v3276_v37  ;;  %v3274_v32 = vadd.f32 %v3270_v56, %v2752_v52 }
 0x9eb   :  { %v3271_v42 = vmax.f32 %v3265_v17, 0.0  ;;  %3486 = vst [vmem:[#allocation14] sm:$0xff] %v3485_v18   ;;  %v3278_v4 = vmax.f32 %v3274_v32, 0.0 }
 0x9ed   :  { %v3275_v30 = vadd.f32 %v3271_v42, %v2755_v10 }
 0x9ef   :  { %v3279_v0 = vmax.f32 %v3275_v30, 0.0 }
 0x9f1   :  { %v3490_v1 = vpack.c.bf16 %v3279_v0, %v3278_v4 }
 0x9f3   :  { %3492 = vst [vmem:[#allocation14 + $0x8] sm:$0xff] %v3490_v1  }
 0x9f4   :  { %4530 = shalt.err (!%p4527_p11)
}
 0x9f5   :  { %3311 = dma.vmem_to_hbm [thread:$0]  %s3306_s14, 256, %s5430_s15, [#allocation4], %s4551_s23, %s4551_s23, %s4552_s24  }
 0x9f6   :  { %4547 = dma.done.wait [#allocation4], 256  }
 0x9f7   :  { %4548 = vsyncadd [#allocation4], 4294967040 }
 0x9f8   :  { %3315 = vsyncpa [#allocation3], 1 }
 0x9f9   :  { %3316 = vsyncpa [#allocation6], 1 }
 0x9fa   :  { %3317 = vsyncpa [#allocation9], 1 }
 0x9fb   :  { %3318 = vsyncpa [#allocation12], 1 }
 0x9fc   :  { %3319 = vsyncpa [#allocation4], 1 }

</bundles_post_ra>
